<compile_context>
chip_gen: v5e
topology: v5e:2x2
jax: 0.10.0
libtpu: 0.0.40
codegen_flags: <defaults>
</compile_context>

<pallas_src>
import functools
import math

import jax
import jax.numpy as jnp
import numpy as np
from jax import lax
from jax.experimental import pallas as pl
from jax.experimental.pallas import tpu as pltpu

STATE_DIM = 16     # simple_normalize hard-codes 16 feature mins/maxes
H1 = 400
H2 = 300
H1P = 512          # padded hidden sizes (multiples of 128)
H2P = 384
MAX_Q = 0.1

_TILE_CHOICES = (128, 256, 512, 1024)   # allowed batch tiles (lane multiples)


def _device_kind():
    try:
        return jax.devices()[0].device_kind.lower()
    except Exception:  # pragma: no cover - defensive
        return ""


_KIND = _device_kind()
# bf16 bias-add/ReLU epilogue relieves the VALU slot on v6e/v7x; keep f32 on
# v5e (no packed-bf16 VPU -> it would unpack and get slower).
_EPI_DTYPE = jnp.float32 if "v5" in _KIND else jnp.bfloat16
# v7x has 2 TensorCores per chip; the "parallel" grid axis is sharded across
# them, so prefer >= 2 tiles when the batch is big enough.
_PREFER_MULTI_TILE = "v7" in _KIND


def _critic_kernel(s_ref, w1_ref, b1_ref, w2_ref, b2_ref, w3_ref, b3_ref,
                   o_ref, *, epi_dtype):
    # Layer 1 (normalization already folded into w1/b1): [TB,16] @ [16,H1P].
    h1 = jnp.dot(s_ref[...], w1_ref[...], preferred_element_type=jnp.float32)
    h1 = jnp.maximum(h1.astype(epi_dtype) + b1_ref[...], 0)

    # Layer 2: [TB,H1P] @ [H1P,H2P]  (dominant matmul).
    h2 = jnp.dot(h1.astype(jnp.bfloat16), w2_ref[...],
                 preferred_element_type=jnp.float32)
    h2 = jnp.maximum(h2.astype(epi_dtype) + b2_ref[...], 0)

    # Layer 3 as a [1,K] x [TB,K] contraction -> lane-dense [1, TB] q-row
    # (avoids an N=1 matmul result and (TB,1) masked stores).
    q = lax.dot_general(
        w3_ref[...], h2.astype(jnp.bfloat16),
        dimension_numbers=(((1,), (1,)), ((), ())),
        preferred_element_type=jnp.float32)
    o_ref[0] = jnp.tanh(q + b3_ref[...]) * MAX_Q          # [1,TB], f32


def _choose_tiling(batch):
    """Pick (TB, n_tiles): smallest allowed tile covering the batch; on v7x cap
    TB so there are >= 2 tiles whenever the batch allows (keep both TCs busy)."""
    tb = _TILE_CHOICES[-1]
    for cand in _TILE_CHOICES:
        if cand >= batch:
            tb = cand
            break
    if _PREFER_MULTI_TILE and batch > _TILE_CHOICES[0]:
        while tb > _TILE_CHOICES[0] and pl.cdiv(batch, tb) < 2:
            tb //= 2
    return tb, pl.cdiv(batch, tb)


@jax.jit
def critic_forward(state, prep):
    """state: [B, 16] float; prep: dict from prepare_params()."""
    B = state.shape[0]
    tb, n_tiles = _choose_tiling(B)
    bp = n_tiles * tb

    state = state.astype(jnp.bfloat16)       # halve the per-step input DMA
    if bp != B:
        state = jnp.pad(state, ((0, bp - B), (0, 0)))

    flops = 2 * bp * (STATE_DIM * H1P + H1P * H2P + H2P)
    bytes_accessed = int(
        state.size * state.dtype.itemsize
        + sum(int(np.prod(v.shape)) * v.dtype.itemsize for v in prep.values())
        + bp * 4)

    out = pl.pallas_call(
        functools.partial(_critic_kernel, epi_dtype=_EPI_DTYPE),
        out_shape=jax.ShapeDtypeStruct((n_tiles, 1, tb), jnp.float32),
        grid=(n_tiles,),
        in_specs=[
            pl.BlockSpec((tb, STATE_DIM), lambda i: (i, 0)),   # state tile
            pl.BlockSpec((STATE_DIM, H1P), lambda i: (0, 0)),  # w1 (resident)
            pl.BlockSpec((1, H1P), lambda i: (0, 0)),          # b1
            pl.BlockSpec((H1P, H2P), lambda i: (0, 0)),        # w2 (resident)
            pl.BlockSpec((1, H2P), lambda i: (0, 0)),          # b2
            pl.BlockSpec((1, H2P), lambda i: (0, 0)),          # w3 row
            pl.BlockSpec((1, 1), lambda i: (0, 0)),            # b3
        ],
        out_specs=pl.BlockSpec((1, 1, tb), lambda i: (i, 0, 0)),
        compiler_params=pltpu.CompilerParams(
            dimension_semantics=("parallel",),
            vmem_limit_bytes=32 * 1024 * 1024,
        ),
        cost_estimate=pl.CostEstimate(
            flops=flops, transcendentals=bp, bytes_accessed=bytes_accessed),
    )(state, prep["w1"], prep["b1"], prep["w2"], prep["b2"],
      prep["w3"], prep["b3"])

    # (n_tiles, 1, TB) lane-dense blocks -> (B, 1)
    return out.reshape(bp)[:B].reshape(B, 1)


def prepare_params(params):
    """Fold simple_normalize into layer 1, pad hidden dims, cast weights to bf16."""
    mins = params["mins"].astype(jnp.float32)     # [1, 16]
    maxes = params["maxes"].astype(jnp.float32)   # [1, 16]
    scale = 1.0 / (maxes - mins)                  # [1, 16]
    shift = mins * scale                          # [1, 16]

    # normalized(s) @ W1 + b1 == s @ (scale[:,None]*W1) + (b1 - shift @ W1)
    w1 = params["w1"] * scale.reshape(STATE_DIM, 1)
    b1 = params["b1"] - shift @ params["w1"]

    # Zero-pad to lane multiples; ReLU(0)=0 and zero w3 rows keep semantics exact.
    w1 = jnp.pad(w1, ((0, 0), (0, H1P - H1)))
    b1 = jnp.pad(b1, ((0, 0), (0, H1P - H1)))
    w2 = jnp.pad(params["w2"], ((0, H1P - H1), (0, H2P - H2)))
    b2 = jnp.pad(params["b2"], ((0, 0), (0, H2P - H2)))
    w3 = jnp.pad(params["w3"].T, ((0, 0), (0, H2P - H2)))   # [1, H2P] row
    b3 = params["b3"]                                        # [1, 1]

    return {
        "w1": w1.astype(jnp.bfloat16),
        "b1": b1.astype(_EPI_DTYPE),
        "w2": w2.astype(jnp.bfloat16),
        "b2": b2.astype(_EPI_DTYPE),
        "w3": w3.astype(jnp.bfloat16),
        "b3": b3.astype(jnp.float32),
    }


def init_params(key):
    """Parameter init mimicking the PyTorch module's __init__ (kaiming a=0 weights,
    default nn.Linear bias init). Weights stored as [in, out]."""
    def kaiming_uniform(k, fan_in, fan_out):
        gain = math.sqrt(2.0)                 # leaky_relu gain with a=0 (as in the module)
        bound = gain * math.sqrt(3.0 / fan_in)
        return jax.random.uniform(k, (fan_in, fan_out), jnp.float32, -bound, bound)

    def bias_init(k, fan_in, fan_out):
        bound = 1.0 / math.sqrt(fan_in)       # default nn.Linear bias init
        return jax.random.uniform(k, (1, fan_out), jnp.float32, -bound, bound)

    k1, k2, k3, k4, k5, k6 = jax.random.split(key, 6)
    params = {
        "w1": kaiming_uniform(k1, STATE_DIM, H1),
        "b1": bias_init(k2, STATE_DIM, H1),
        "w2": kaiming_uniform(k3, H1, H2),
        "b2": bias_init(k4, H1, H2),
        "w3": kaiming_uniform(k5, H2, 1),
        "b3": bias_init(k6, H2, 1),
    }
    maxes = np.array([0.2, 0.35, 0.1, 1, 1, 1, 1, np.pi / 2, 0, np.pi / 2,
                      np.pi, 1, 1, 1, 0.5, 0.5], dtype=np.float32)
    mins = np.array([-0.2, -0.05, 0.0, 0, 0, 0, 0, -np.pi / 2, -np.pi,
                     -np.pi / 2, 0, 0, 0, 0, -0.01, -0.01], dtype=np.float32)
    params["maxes"] = jnp.asarray(maxes)[None, :]
    params["mins"] = jnp.asarray(mins)[None, :]
    return params


def reference_forward(state, params):
    """Pure-JAX f32 reference with the ORIGINAL (unfolded, unpadded) params."""
    s = (state - params["mins"]) / (params["maxes"] - params["mins"])
    h1 = jnp.maximum(s @ params["w1"] + params["b1"], 0.0)
    h2 = jnp.maximum(h1 @ params["w2"] + params["b2"], 0.0)
    return jnp.tanh(h2 @ params["w3"] + params["b3"]) * MAX_Q


def reference_forward_prepared(state, prep):
    """Pure-JAX mirror of the kernel math (same folded/padded/bf16 params and
    same epilogue dtype)."""
    s = state.astype(jnp.bfloat16)
    h1 = jnp.dot(s, prep["w1"], preferred_element_type=jnp.float32)
    h1 = jnp.maximum(h1.astype(_EPI_DTYPE) + prep["b1"], 0)
    h2 = jnp.dot(h1.astype(jnp.bfloat16), prep["w2"],
                 preferred_element_type=jnp.float32)
    h2 = jnp.maximum(h2.astype(_EPI_DTYPE) + prep["b2"], 0)
    q = jnp.dot(h2.astype(jnp.bfloat16), prep["w3"].T,
                preferred_element_type=jnp.float32) + prep["b3"]
    return jnp.tanh(q) * MAX_Q


if __name__ == "__main__":
    key = jax.random.PRNGKey(0)
    pkey, skey, skey2 = jax.random.split(key, 3)
    params = init_params(pkey)
    prep = prepare_params(params)

    # Small demo batch (matches typical RL critic usage).
    B = 2
    state = jax.random.normal(skey, (B, STATE_DIM), jnp.float32)

    q = critic_forward(state, prep)
    q = jax.block_until_ready(q)
    assert q.shape == (B, 1)

    # Tight check: kernel vs. plain-JAX forward with the SAME prepared params
    # (validates folding/padding/tiling/lane-dense output mechanics exactly).
    q_prep_ref = reference_forward_prepared(state, prep)
    np.testing.assert_allclose(np.asarray(q), np.asarray(q_prep_ref),
                               rtol=3e-3, atol=2e-4)

    # Semantics check against the original f32 module math; bf16 matmul operands
    # imply a looser tolerance here (outputs are bounded by max_q_value=0.1).
    q_ref = reference_forward(state, params)
    np.testing.assert_allclose(np.asarray(q), np.asarray(q_ref),
                               rtol=5e-2, atol=1e-2)

    # Exercise a non-trivial / non-multiple batch to cover adaptive tiling,
    # padding and the trim-back path.
    B2 = 300
    state2 = jax.random.normal(skey2, (B2, STATE_DIM), jnp.float32)
    q2 = jax.block_until_ready(critic_forward(state2, prep))
    assert q2.shape == (B2, 1)
    q2_prep_ref = reference_forward_prepared(state2, prep)
    np.testing.assert_allclose(np.asarray(q2), np.asarray(q2_prep_ref),
                               rtol=3e-3, atol=2e-4)

    print("KERNEL_OK")
</pallas_src>

<mosaic_0001>
module attributes {stable_mosaic.version = 11 : i64} {
  func.func @_critic_kernel(%arg0: i32, %arg1: memref<128x16xbf16, #tpu.memory_space<vmem>>, %arg2: memref<16x512xbf16, #tpu.memory_space<vmem>>, %arg3: memref<1x512xbf16, #tpu.memory_space<vmem>>, %arg4: memref<512x384xbf16, #tpu.memory_space<vmem>>, %arg5: memref<1x384xbf16, #tpu.memory_space<vmem>>, %arg6: memref<1x384xbf16, #tpu.memory_space<vmem>>, %arg7: memref<1x1xf32, #tpu.memory_space<vmem>>, %arg8: memref<1x1x128xf32, #tpu.memory_space<vmem>>) attributes {dimension_semantics = [#tpu.dimension_semantics<parallel>], iteration_bounds = array<i64: 1>, scalar_prefetch = 0 : i64, scratch_operands = 0 : i64, tpu.core_type = #tpu.core_type<tc>, window_params = [{transform_indices = @transform_0, window_bounds = array<i64: 128, 16>}, {pipeline_mode = #tpu.pipeline_mode<synchronous>, transform_indices = @transform_1, window_bounds = array<i64: 16, 512>}, {pipeline_mode = #tpu.pipeline_mode<synchronous>, transform_indices = @transform_2, window_bounds = array<i64: 1, 512>}, {pipeline_mode = #tpu.pipeline_mode<synchronous>, transform_indices = @transform_3, window_bounds = array<i64: 512, 384>}, {pipeline_mode = #tpu.pipeline_mode<synchronous>, transform_indices = @transform_4, window_bounds = array<i64: 1, 384>}, {pipeline_mode = #tpu.pipeline_mode<synchronous>, transform_indices = @transform_5, window_bounds = array<i64: 1, 384>}, {pipeline_mode = #tpu.pipeline_mode<synchronous>, transform_indices = @transform_6, window_bounds = array<i64: 1, 1>}, {transform_indices = @transform_7, window_bounds = array<i64: 1, 1, 128>}]} {
    %c0 = arith.constant 0 : index
    %c0_0 = arith.constant 0 : index
    %0 = vector.load %arg1[%c0, %c0_0] : memref<128x16xbf16, #tpu.memory_space<vmem>>, vector<128x16xbf16>
    %c0_1 = arith.constant 0 : index
    %c0_2 = arith.constant 0 : index
    %1 = vector.load %arg2[%c0_1, %c0_2] : memref<16x512xbf16, #tpu.memory_space<vmem>>, vector<16x512xbf16>
    %cst = arith.constant dense<0.000000e+00> : vector<128x512xf32>
    %2 = tpu.matmul %0, %1, %cst {dimension_numbers = #tpu.dot_dimension_numbers<[1], [0], [0], [1], [0, 0, 1, 1], [], []>} : vector<128x16xbf16>, vector<16x512xbf16>, vector<128x512xf32> -> vector<128x512xf32>
    %3 = arith.truncf %2 : vector<128x512xf32> to vector<128x512xbf16>
    %c0_3 = arith.constant 0 : index
    %c0_4 = arith.constant 0 : index
    %4 = vector.load %arg3[%c0_3, %c0_4] : memref<1x512xbf16, #tpu.memory_space<vmem>>, vector<1x512xbf16>
    %5 = vector.broadcast %4 : vector<1x512xbf16> to vector<128x512xbf16>
    %6 = arith.addf %3, %5 : vector<128x512xbf16>
    %cst_5 = arith.constant 0.000000e+00 : bf16
    %7 = vector.broadcast %cst_5 : bf16 to vector<128x512xbf16>
    %8 = arith.maximumf %6, %7 : vector<128x512xbf16>
    %c0_6 = arith.constant 0 : index
    %c0_7 = arith.constant 0 : index
    %9 = vector.load %arg4[%c0_6, %c0_7] : memref<512x384xbf16, #tpu.memory_space<vmem>>, vector<512x384xbf16>
    %cst_8 = arith.constant dense<0.000000e+00> : vector<128x384xf32>
    %10 = tpu.matmul %8, %9, %cst_8 {dimension_numbers = #tpu.dot_dimension_numbers<[1], [0], [0], [1], [0, 0, 1, 1], [], []>} : vector<128x512xbf16>, vector<512x384xbf16>, vector<128x384xf32> -> vector<128x384xf32>
    %11 = arith.truncf %10 : vector<128x384xf32> to vector<128x384xbf16>
    %c0_9 = arith.constant 0 : index
    %c0_10 = arith.constant 0 : index
    %12 = vector.load %arg5[%c0_9, %c0_10] : memref<1x384xbf16, #tpu.memory_space<vmem>>, vector<1x384xbf16>
    %13 = vector.broadcast %12 : vector<1x384xbf16> to vector<128x384xbf16>
    %14 = arith.addf %11, %13 : vector<128x384xbf16>
    %cst_11 = arith.constant 0.000000e+00 : bf16
    %15 = vector.broadcast %cst_11 : bf16 to vector<128x384xbf16>
    %16 = arith.maximumf %14, %15 : vector<128x384xbf16>
    %c0_12 = arith.constant 0 : index
    %c0_13 = arith.constant 0 : index
    %17 = vector.load %arg6[%c0_12, %c0_13] : memref<1x384xbf16, #tpu.memory_space<vmem>>, vector<1x384xbf16>
    %cst_14 = arith.constant dense<0.000000e+00> : vector<1x128xf32>
    %18 = tpu.matmul %17, %16, %cst_14 {dimension_numbers = #tpu.dot_dimension_numbers<[1], [1], [0], [0], [0, 0, 1, 0], [], []>} : vector<1x384xbf16>, vector<128x384xbf16>, vector<1x128xf32> -> vector<1x128xf32>
    %c0_15 = arith.constant 0 : index
    %c0_16 = arith.constant 0 : index
    %19 = vector.load %arg7[%c0_15, %c0_16] : memref<1x1xf32, #tpu.memory_space<vmem>>, vector<1x1xf32>
    %20 = vector.broadcast %19 : vector<1x1xf32> to vector<1x128xf32>
    %21 = arith.addf %18, %20 : vector<1x128xf32>
    %22 = math.tanh %21 : vector<1x128xf32>
    %cst_17 = arith.constant 1.000000e-01 : f32
    %23 = vector.broadcast %cst_17 : f32 to vector<1x128xf32>
    %24 = arith.mulf %22, %23 : vector<1x128xf32>
    %c0_18 = arith.constant 0 : index
    %c0_19 = arith.constant 0 : index
    %c0_20 = arith.constant 0 : index
    %25 = vector.load %arg8[%c0_18, %c0_19, %c0_20] : memref<1x1x128xf32, #tpu.memory_space<vmem>>, vector<1x1x128xf32>
    %26 = vector.shape_cast %25 : vector<1x1x128xf32> to vector<1x128xf32>
    %27 = vector.shape_cast %24 : vector<1x128xf32> to vector<1x1x128xf32>
    tpu.vector_store %arg8[%c0_18, %c0_19, %c0_20], %27 {strides = array<i32>} : memref<1x1x128xf32, #tpu.memory_space<vmem>>, vector<1x1x128xf32>,
    return
  }
  func.func @transform_0(%arg0: i32) -> (i32, i32) {
    %c0_i32 = arith.constant 0 : i32
    %c0_i32_0 = arith.constant 0 : i32
    return %arg0, %c0_i32 : i32, i32
  }
  func.func @transform_1(%arg0: i32) -> (i32, i32) {
    %c0_i32 = arith.constant 0 : i32
    %c0_i32_0 = arith.constant 0 : i32
    %c0_i32_1 = arith.constant 0 : i32
    return %c0_i32, %c0_i32_0 : i32, i32
  }
  func.func @transform_2(%arg0: i32) -> (i32, i32) {
    %c0_i32 = arith.constant 0 : i32
    %c0_i32_0 = arith.constant 0 : i32
    %c0_i32_1 = arith.constant 0 : i32
    return %c0_i32, %c0_i32_0 : i32, i32
  }
  func.func @transform_3(%arg0: i32) -> (i32, i32) {
    %c0_i32 = arith.constant 0 : i32
    %c0_i32_0 = arith.constant 0 : i32
    %c0_i32_1 = arith.constant 0 : i32
    return %c0_i32, %c0_i32_0 : i32, i32
  }
  func.func @transform_4(%arg0: i32) -> (i32, i32) {
    %c0_i32 = arith.constant 0 : i32
    %c0_i32_0 = arith.constant 0 : i32
    %c0_i32_1 = arith.constant 0 : i32
    return %c0_i32, %c0_i32_0 : i32, i32
  }
  func.func @transform_5(%arg0: i32) -> (i32, i32) {
    %c0_i32 = arith.constant 0 : i32
    %c0_i32_0 = arith.constant 0 : i32
    %c0_i32_1 = arith.constant 0 : i32
    return %c0_i32, %c0_i32_0 : i32, i32
  }
  func.func @transform_6(%arg0: i32) -> (i32, i32) {
    %c0_i32 = arith.constant 0 : i32
    %c0_i32_0 = arith.constant 0 : i32
    %c0_i32_1 = arith.constant 0 : i32
    return %c0_i32, %c0_i32_0 : i32, i32
  }
  func.func @transform_7(%arg0: i32) -> (i32, i32, i32) {
    %c0_i32 = arith.constant 0 : i32
    %c0_i32_0 = arith.constant 0 : i32
    %c0_i32_1 = arith.constant 0 : i32
    return %arg0, %c0_i32, %c0_i32_0 : i32, i32, i32
  }
}

</mosaic_0001>

<bundles_post_ra>
// kernel: critic_forward.1
= control target key start
LH: loop header
LB: loop body
LE: loop exit
PB: predicated region body
PF: predicated region fallthrough
CT: control target
= control target key end

     0   :  { %s3460_s0 = inlined_call_operand.vmem [shape: bf16[128,16], index: 0, kind: input, shape index: {}]   ;;  %s3461_s1 = inlined_call_operand.vmem [shape: bf16[16,512], index: 1, kind: input, shape index: {}]   ;;  %s3462_s2 = inlined_call_operand.vmem [shape: bf16[1,512], index: 2, kind: input, shape index: {}]   ;;  %s3463_s3 = inlined_call_operand.hbm [shape: bf16[512,384], index: 3, kind: input, shape index: {}]   ;;  %s3464_s4 = inlined_call_operand.vmem [shape: bf16[1,384], index: 4, kind: input, shape index: {}]   ;;  %s3465_s5 = inlined_call_operand.vmem [shape: bf16[1,384], index: 5, kind: input, shape index: {}]   ;;  %s3466_s6 = inlined_call_operand.<no memory space> [shape: f32[1,1], index: 6, kind: input, shape index: {}]   ;;  %s3467_s7 = inlined_call_operand.vmem [shape: f32[1,1,128], index: 7, kind: output, shape index: {}]  }
   0x1   :  { %v12_v0 = vstv %s3466_s6 }
   0x2   :  { %13 = vst [vmem:[#allocation2] sm:$0x1] %v12_v0 }
   0x3   :  { %14 = vsyncpa [#allocation4], 0  ;;  %s25_s28 = sshll.u32 %s3463_s3, 4  ;;  %s2915_s29 = smov [#allocation3]   ;;  %s26_s28 = int_to_ptr.hbm [resolvable:$true] %s25_s28 }
   0x4   :  { %s27_s30 = sshll.u32 %s2915_s29, 4  ;;  %s2916_s8 = smov 192   ;;  %s28_s30 = int_to_ptr.vmem [resolvable:$true] %s27_s30 }
   0x5   :  { %s2917_s9 = smov 12  }
   0x6   :  { %33 = dma.hbm_to_vmem [thread:$0]  %s26_s28, 12288, %s28_s30, [#allocation4], %s2916_s8, %s2916_s8, %s2917_s9  }
   0x7   :  { %2913 = dma.done.wait [#allocation4], 12288  }
   0x8   :  { %2914 = vsyncadd [#allocation4], 4294955008  ;;  %v2344_v1 = vld [vmem:[%s3461_s1] sm:$0xf]  ;;  %v2784_v2 = vld [vmem:[%s3461_s1 + $0xc] sm:$0xf0] }
   0x9   :  { %v2782_v3 = vld [vmem:[%s3461_s1 + $0x4] sm:$0xf]  ;;  %v2345_v4 = vor.u32 %v2784_v2, %v2344_v1  ;;  %v2346_v5 = vld [vmem:[%s3461_s1 + $0x10] sm:$0xf0]  ;;  %v2352_v6 = vld [vmem:[%s3461_s1 + $0x8] sm:$0xf] }
   0xa   :  { %v2785_v7 = vld [vmem:[%s3461_s1 + $0x14] sm:$0xf0]  ;;  %v2349_v8 = vor.u32 %v2782_v3, %v2346_v5  ;;  %v2783_v10 = vld [vmem:[%s3461_s1 + $0xc] sm:$0xf]  ;;  %v2354_v11 = vld [vmem:[%s3461_s1 + $0x18] sm:$0xf0] }
   0xb   :  { %v2353_v9 = vor.u32 %v2785_v7, %v2352_v6  ;;  %v2774_v12 = vld [vmem:[%s3460_s0] sm:$0xff]  ;;  %157 = vmatpush.bf16.msra.mxu0 %v2345_v4  ;;  %v2357_v13 = vor.u32 %v2783_v10, %v2354_v11  ;;  %vm125_vm0 = vcmask 130048   ;;  %v2775_v14 = vld [vmem:[%s3460_s0 + $0x8] sm:$0xff]  ;;  %v2776_v15 = vld [vmem:[%s3460_s0 + $0x10] sm:$0xff] }
   0xc   :  { %206 = vmatpush.bf16.msra.mxu1 %v2349_v8  ;;  %v2777_v16 = vld [vmem:[%s3460_s0 + $0x18] sm:$0xff]  ;;  %v2668_v17 = vld [vmem:[#allocation3 + $0x228] sm:$0xf]  ;;  %v2778_v29 = vld [vmem:[%s3460_s0 + $0x20] sm:$0xff] }
   0xd   :  { %255 = vmatpush.bf16.msra.mxu2 %v2353_v9  ;;  %304 = vmatpush.bf16.msra.mxu3 %v2357_v13  ;;  %v2856_v18 = vld [vmem:[#allocation3 + $0x230] sm:$0xf0]  ;;  %v2764_v19 = vld [vmem:[#allocation3 + $0x2e8] sm:$0xf]  ;;  %v2656_v30 = vld [vmem:[#allocation3 + $0x210] sm:$0xf] }
   0xe   :  { %2358 = vmatmul.msk.bf16.vlgmr.msra.gmra.mxu0 %vm125_vm0, %v2774_v12  ;;  %v2669_v20 = vor.u32 %v2856_v18, %v2668_v17  ;;  %v2880_v21 = vld [vmem:[#allocation3 + $0x2f0] sm:$0xf0]  ;;  %v2476_v22 = vld [vmem:[#allocation3 + $0xa8] sm:$0xf]  ;;  %v2853_v31 = vld [vmem:[#allocation3 + $0x218] sm:$0xf0] }
   0xf   :  { %2366 = vmatmul.msk.bf16.vlgmr.msra.gmra.mxu1 %vm125_vm0, %v2774_v12  ;;  %v2808_v23 = vld [vmem:[#allocation3 + $0xb0] sm:$0xf0]  ;;  %v2765_v24 = vor.u32 %v2880_v21, %v2764_v19  ;;  %v2572_v26 = vld [vmem:[#allocation3 + $0x168] sm:$0xf]  ;;  %v2752_v32 = vld [vmem:[#allocation3 + $0x2d0] sm:$0xf]  ;;  %v2657_v33 = vor.u32 %v2853_v31, %v2656_v30 }
  0x10   :  { %2374 = vmatmul.msk.bf16.vlgmr.msra.gmra.mxu2 %vm125_vm0, %v2774_v12  ;;  %2382 = vmatmul.msk.bf16.vlgmr.msra.gmra.mxu3 %vm125_vm0, %v2774_v12  ;;  %v2477_v25 = vor.u32 %v2808_v23, %v2476_v22  ;;  %v2832_v27 = vld [vmem:[#allocation3 + $0x170] sm:$0xf0]  ;;  %v2877_v34 = vld [vmem:[#allocation3 + $0x2d8] sm:$0xf0]  ;;  %v2464_v35 = vld [vmem:[#allocation3 + $0x90] sm:$0xf] }
  0x11   :  { %1459 = vmatpush.bf16.msrb.mxu2 %v2669_v20  ;;  %v2573_v28 = vor.u32 %v2832_v27, %v2572_v26  ;;  %1508 = vmatpush.bf16.msrb.mxu3 %v2765_v24  ;;  %v2805_v36 = vld [vmem:[#allocation3 + $0x98] sm:$0xf0]  ;;  %v2753_v37 = vor.u32 %v2877_v34, %v2752_v32  ;;  %v2560_v39 = vld [vmem:[#allocation3 + $0x150] sm:$0xf]  ;;  %v2644_v43 = vld [vmem:[#allocation3 + $0x1f8] sm:$0xf] }
  0x12   :  { %1361 = vmatpush.bf16.msrb.mxu0 %v2477_v25  ;;  %v2465_v38 = vor.u32 %v2805_v36, %v2464_v35  ;;  %v2829_v40 = vld [vmem:[#allocation3 + $0x158] sm:$0xf0]  ;;  %v2850_v44 = vld [vmem:[#allocation3 + $0x200] sm:$0xf0]  ;;  %v2452_v45 = vld [vmem:[#allocation3 + $0x78] sm:$0xf] }
  0x13   :  { %1410 = vmatpush.bf16.msrb.mxu1 %v2573_v28  ;;  %v2561_v41 = vor.u32 %v2829_v40, %v2560_v39  ;;  %v2779_v42 = vld [vmem:[%s3460_s0 + $0x28] sm:$0xff]  ;;  %v2645_v46 = vor.u32 %v2850_v44, %v2644_v43  ;;  %v2548_v48 = vld [vmem:[#allocation3 + $0x138] sm:$0xf]  ;;  %v2780_v55 = vld [vmem:[%s3460_s0 + $0x30] sm:$0xff] }
  0x14   :  { %v2802_v47 = vld [vmem:[#allocation3 + $0x80] sm:$0xf0]  ;;  %v2740_v52 = vld [vmem:[#allocation3 + $0x2b8] sm:$0xf]  ;;  %v2440_v57 = vld [vmem:[#allocation3 + $0x60] sm:$0xf] }
  0x15   :  { %1460 = vmatpush.bf16.msrb.mxu2 %v2657_v33  ;;  %1509 = vmatpush.bf16.msrb.mxu3 %v2753_v37  ;;  %v2826_v49 = vld [vmem:[#allocation3 + $0x140] sm:$0xf0]  ;;  %v2453_v50 = vor.u32 %v2802_v47, %v2452_v45  ;;  %v378_v56 = vld [vmem:[%s3462_s2] sm:$0xf]  ;;  %v2799_v58 = vld [vmem:[#allocation3 + $0x68] sm:$0xf0] }
  0x16   :  { %1362 = vmatpush.bf16.msrb.mxu0 %v2465_v38  ;;  %v2549_v51 = vor.u32 %v2826_v49, %v2548_v48  ;;  %v2874_v53 = vld [vmem:[#allocation3 + $0x2c0] sm:$0xf0]  ;;  %380 = vst [vmem:[#allocation1] ss:$9 sm:$0xff] %v378_v56  ;;  %v2441_v59 = vor.u32 %v2799_v58, %v2440_v57  ;;  %v2536_v60 = vld [vmem:[#allocation3 + $0x120] sm:$0xf] }
  0x17   :  { %1411 = vmatpush.bf16.msrb.mxu1 %v2561_v41  ;;  %v2741_v54 = vor.u32 %v2874_v53, %v2740_v52  ;;  %v2823_v61 = vld [vmem:[#allocation3 + $0x128] sm:$0xf0]  ;;  %v2428_v63 = vld [vmem:[#allocation3 + $0x48] sm:$0xf]  ;;  %v2796_v0 = vld [vmem:[#allocation3 + $0x50] sm:$0xf0] }
  0x18   :  { %v2537_v62 = vor.u32 %v2823_v61, %v2536_v60  ;;  %v2524_v1 = vld [vmem:[#allocation3 + $0x108] sm:$0xf]  ;;  %v2429_v2 = vor.u32 %v2796_v0, %v2428_v63  ;;  %v2820_v3 = vld [vmem:[#allocation3 + $0x110] sm:$0xf0]  ;;  %v2632_v5 = vld [vmem:[#allocation3 + $0x1e0] sm:$0xf] }
  0x19   :  { %1461 = vmatpush.bf16.msrb.mxu2 %v2645_v46  ;;  %1510 = vmatpush.bf16.msrb.mxu3 %v2741_v54  ;;  %v2525_v4 = vor.u32 %v2820_v3, %v2524_v1  ;;  %v2847_v6 = vld [vmem:[#allocation3 + $0x1e8] sm:$0xf0]  ;;  %v2728_v7 = vld [vmem:[#allocation3 + $0x2a0] sm:$0xf]  ;;  %v2416_v10 = vld [vmem:[#allocation3 + $0x30] sm:$0xf] }
  0x1a   :  { %1363 = vmatpush.bf16.msrb.mxu0 %v2453_v50  ;;  %v2633_v8 = vor.u32 %v2847_v6, %v2632_v5  ;;  %v2871_v9 = vld [vmem:[#allocation3 + $0x2a8] sm:$0xf0]  ;;  %v2793_v12 = vld [vmem:[#allocation3 + $0x38] sm:$0xf0]  ;;  %v2512_v13 = vld [vmem:[#allocation3 + $0xf0] sm:$0xf] }
  0x1b   :  { %1412 = vmatpush.bf16.msrb.mxu1 %v2549_v51  ;;  %v2729_v11 = vor.u32 %v2871_v9, %v2728_v7  ;;  %v2844_v18 = vld [vmem:[#allocation3 + $0x1d0] sm:$0xf0]  ;;  %v2716_v19 = vld [vmem:[#allocation3 + $0x288] sm:$0xf]  ;;  %v2404_v22 = vld [vmem:[#allocation3 + $0x18] sm:$0xf] }
  0x1c   :  { %v2868_v21 = vld [vmem:[#allocation3 + $0x290] sm:$0xf0]  ;;  %v2790_v23 = vld [vmem:[#allocation3 + $0x20] sm:$0xf0]  ;;  %v2500_v26 = vld [vmem:[#allocation3 + $0xd8] sm:$0xf] }
  0x1d   :  { %1462 = vmatpush.bf16.msrb.mxu2 %v2633_v8  ;;  %1511 = vmatpush.bf16.msrb.mxu3 %v2729_v11  ;;  %v2717_v24 = vor.u32 %v2868_v21, %v2716_v19  ;;  %v2405_v25 = vor.u32 %v2790_v23, %v2404_v22  ;;  %v2814_v27 = vld [vmem:[#allocation3 + $0xe0] sm:$0xf0]  ;;  %v2781_v28 = vld [vmem:[%s3460_s0 + $0x38] sm:$0xff]  ;;  %v2841_v33 = vld [vmem:[#allocation3 + $0x1b8] sm:$0xf0] }
  0x1e   :  { %2359 = vmatmul.msk.bf16.gmra.mxu0 %vm125_vm0, %v2775_v14  ;;  %v382_v30 = vld [vmem:[#allocation1 + $0x9] sm:$0xff]  ;;  %v2501_v31 = vor.u32 %v2814_v27, %v2500_v26  ;;  %v2608_v32 = vld [vmem:[#allocation3 + $0x1b0] sm:$0xf]  ;;  %v2865_v38 = vld [vmem:[#allocation3 + $0x278] sm:$0xf0] }
  0x1f   :  { %2367 = vmatmul.msk.bf16.gmra.mxu1 %vm125_vm0, %v2775_v14  ;;  %1364 = vmatpush.bf16.msrb.mxu0 %v2441_v59  ;;  %v2704_v34 = vld [vmem:[#allocation3 + $0x270] sm:$0xf]  ;;  %v2609_v37 = vor.u32 %v2841_v33, %v2608_v32  ;;  %v1981_v39 = vld [vmem:[%s3464_s4] sm:$0x7]  ;;  %v2392_v41 = vld [vmem:[#allocation3] sm:$0xf]  ;;  %v388_v60 = vpack.i.b16 %v382_v30, %v382_v30 }
  0x20   :  { %2375 = vmatmul.msk.bf16.gmra.mxu2 %vm125_vm0, %v2775_v14  ;;  %2383 = vmatmul.msk.bf16.gmra.mxu3 %vm125_vm0, %v2775_v14  ;;  %v2817_v14 = vld [vmem:[#allocation3 + $0xf8] sm:$0xf0]  ;;  %v383_v35 = vld [vmem:[#allocation1 + $0x12] sm:$0xff]  ;;  %v384_v36 = vld [vmem:[#allocation1 + $0x1b] sm:$0xff]  ;;  %v2705_v40 = vor.u32 %v2865_v38, %v2704_v34 }
  0x21   :  { %1413 = vmatpush.bf16.msrb.mxu1 %v2537_v62  ;;  %v2513_v17 = vor.u32 %v2817_v14, %v2512_v13  ;;  %1512 = vmatpush.bf16.msrb.mxu3 %v2717_v24  ;;  %v2488_v43 = vld [vmem:[#allocation3 + $0xc0] sm:$0xf]  ;;  %v2811_v44 = vld [vmem:[#allocation3 + $0xc8] sm:$0xf0]  ;;  %v2596_v46 = vld [vmem:[#allocation3 + $0x198] sm:$0xf]  ;;  %v391_v7 = vpack.i.b16 %v383_v35, %v383_v35  ;;  %v394_v8 = vpack.i.b16 %v384_v36, %v384_v36 }
  0x22   :  { %v2838_v47 = vld [vmem:[#allocation3 + $0x1a0] sm:$0xf0]  ;;  %v2692_v48 = vld [vmem:[#allocation3 + $0x258] sm:$0xf]  ;;  %v2489_v49 = vor.u32 %v2811_v44, %v2488_v43  ;;  %v2584_v53 = vld [vmem:[#allocation3 + $0x180] sm:$0xf] }
  0x23   :  { %1365 = vmatpush.bf16.msrb.mxu0 %v2429_v2  ;;  %v2597_v50 = vor.u32 %v2838_v47, %v2596_v46  ;;  %v2862_v51 = vld [vmem:[#allocation3 + $0x260] sm:$0xf0]  ;;  %v2835_v54 = vld [vmem:[#allocation3 + $0x188] sm:$0xf0]  ;;  %v390_v1 = vperm.slane %v388_v60, 0 }
  0x24   :  { %v2693_v52 = vor.u32 %v2862_v51, %v2692_v48  ;;  %v2585_v56 = vor.u32 %v2835_v54, %v2584_v53  ;;  %v2859_v57 = vld [vmem:[#allocation3 + $0x248] sm:$0xf0] }
  0x25   :  { %1414 = vmatpush.bf16.msrb.mxu1 %v2525_v4  ;;  %1513 = vmatpush.bf16.msrb.mxu3 %v2705_v40  ;;  %v3053_v5 = vunpack.c.l.bf16 %v390_v1 }
  0x29   :  { %1415 = vmatpush.bf16.msrb.mxu1 %v2513_v17  ;;  %1514 = vmatpush.bf16.msrb.mxu3 %v2693_v52  ;;  %v396_v17 = vperm.slane %v394_v8, 0 }
  0x2b   :  { %v3061_v27 = vunpack.c.l.bf16 %v396_v17 }
  0x2d   :  { %1416 = vmatpush.bf16.msrb.mxu1 %v2501_v31 }
  0x2e   :  { %2360 = vmatmul.msk.bf16.gmra.mxu0 %vm125_vm0, %v2776_v15 }
  0x2f   :  { %2368 = vmatmul.msk.bf16.gmra.mxu1 %vm125_vm0, %v2776_v15 }
  0x30   :  { %2376 = vmatmul.msk.bf16.gmra.mxu2 %vm125_vm0, %v2776_v15  ;;  %2384 = vmatmul.msk.bf16.gmra.mxu3 %vm125_vm0, %v2776_v15  ;;  %v2417_v15 = vor.u32 %v2793_v12, %v2416_v10 }
  0x31   :  { %1417 = vmatpush.bf16.msrb.mxu1 %v2489_v49 }
  0x32   :  { %1366 = vmatpush.bf16.msrb.mxu0 %v2417_v15 }
  0x36   :  { %1367 = vmatpush.bf16.msrb.mxu0 %v2405_v25 }
  0x3e   :  { %2361 = vmatmul.msk.bf16.gmra.mxu0 %vm125_vm0, %v2777_v16 }
  0x3f   :  { %2369 = vmatmul.msk.bf16.gmra.mxu1 %vm125_vm0, %v2777_v16 }
  0x40   :  { %2377 = vmatmul.msk.bf16.gmra.mxu2 %vm125_vm0, %v2777_v16  ;;  %2385 = vmatmul.msk.bf16.gmra.mxu3 %vm125_vm0, %v2777_v16  ;;  %v2620_v16 = vld [vmem:[#allocation3 + $0x1c8] sm:$0xf] }
  0x41   :  { %v2621_v20 = vor.u32 %v2844_v18, %v2620_v16  ;;  %v393_v16 = vperm.slane %v391_v7, 0 }
  0x43   :  { %1463 = vmatpush.bf16.msrb.mxu2 %v2621_v20  ;;  %v3059_v26 = vunpack.c.l.bf16 %v393_v16 }
  0x47   :  { %1464 = vmatpush.bf16.msrb.mxu2 %v2609_v37 }
  0x4b   :  { %1465 = vmatpush.bf16.msrb.mxu2 %v2597_v50 }
  0x4e   :  { %2362 = vmatmul.msk.bf16.gmra.mxu0 %vm125_vm0, %v2778_v29 }
  0x4f   :  { %2370 = vmatmul.msk.bf16.gmra.mxu1 %vm125_vm0, %v2778_v29  ;;  %1466 = vmatpush.bf16.msrb.mxu2 %v2585_v56 }
  0x50   :  { %2378 = vmatmul.msk.bf16.gmra.mxu2 %vm125_vm0, %v2778_v29  ;;  %2386 = vmatmul.msk.bf16.gmra.mxu3 %vm125_vm0, %v2778_v29  ;;  %v381_v29 = vld [vmem:[#allocation1] sm:$0xff] }
  0x51   :  { %1983 = vst [vmem:[#allocation1] ss:$9 sm:$0xff] %v1981_v39  ;;  %v385_v59 = vpack.i.b16 %v381_v29, %v381_v29 }
  0x53   :  { %v387_v0 = vperm.slane %v385_v59, 0 }
  0x55   :  { %v3051_v4 = vunpack.c.l.bf16 %v387_v0 }
  0x5e   :  { %2363 = vmatmul.msk.bf16.gmra.mxu0 %vm125_vm0, %v2779_v42 }
  0x5f   :  { %2371 = vmatmul.msk.bf16.gmra.mxu1 %vm125_vm0, %v2779_v42 }
  0x60   :  { %2379 = vmatmul.msk.bf16.gmra.mxu2 %vm125_vm0, %v2779_v42  ;;  %2387 = vmatmul.msk.bf16.gmra.mxu3 %vm125_vm0, %v2779_v42  ;;  %v2787_v42 = vld [vmem:[#allocation3 + $0x8] sm:$0xf0] }
  0x61   :  { %v2393_v45 = vor.u32 %v2787_v42, %v2392_v41 }
  0x63   :  { %1368 = vmatpush.bf16.msrb.mxu0 %v2393_v45 }
  0x6e   :  { %2364 = vmatmul.msk.bf16.gmra.mxu0 %vm125_vm0, %v2780_v55 }
  0x6f   :  { %2372 = vmatmul.msk.bf16.gmra.mxu1 %vm125_vm0, %v2780_v55 }
  0x70   :  { %2380 = vmatmul.msk.bf16.gmra.mxu2 %vm125_vm0, %v2780_v55  ;;  %2388 = vmatmul.msk.bf16.gmra.mxu3 %vm125_vm0, %v2780_v55  ;;  %v2680_v55 = vld [vmem:[#allocation3 + $0x240] sm:$0xf] }
  0x71   :  { %v2681_v58 = vor.u32 %v2859_v57, %v2680_v55 }
  0x73   :  { %1515 = vmatpush.bf16.msrb.mxu3 %v2681_v58 }
  0x7e   :  { %2365 = vmatmul.msk.bf16.gmra.mxu0 %vm125_vm0, %v2781_v28 }
  0x7f   :  { %2373 = vmatmul.msk.bf16.gmra.mxu1 %vm125_vm0, %v2781_v28 }
  0x80   :  { %2381 = vmatmul.msk.bf16.gmra.mxu2 %vm125_vm0, %v2781_v28  ;;  %2389 = vmatmul.msk.bf16.gmra.mxu3 %vm125_vm0, %v2781_v28 }
  0x8b   :  { %v159_v61 = vpop.f32.mrf.mxu0 }
  0x8c   :  { %v208_v62 = vpop.f32.mrf.mxu1 }
  0x8d   :  { %v346_v63 = vpack.c.bf16 %v208_v62, %v159_v61 }
  0x8f   :  { %v397_v2 = vunpack.c.l.bf16 %v346_v63  ;;  %v398_v3 = vunpack.c.h.bf16 %v346_v63 }
  0x91   :  { %v465_v12 = vadd.f32 %v3051_v4, %v397_v2  ;;  %v466_v13 = vadd.f32 %v3053_v5, %v398_v3 }
  0x93   :  { %v257_v6 = vpop.f32.mrf.mxu2  ;;  %v306_v9 = vpop.f32.mrf.mxu3  ;;  %v625_v20 = vmax.f32 %v465_v12, 0.0  ;;  %v626_v21 = vmax.f32 %v466_v13, 0.0 }
  0x94   :  { %v161_v10 = vpop.f32.mrf.mxu0  ;;  %v210_v11 = vpop.f32.mrf.mxu1  ;;  %v347_v15 = vpack.c.bf16 %v306_v9, %v257_v6 }
  0x95   :  { %v348_v14 = vpack.c.bf16 %v210_v11, %v161_v10 }
  0x96   :  { %v399_v24 = vunpack.c.l.bf16 %v347_v15  ;;  %v400_v25 = vunpack.c.h.bf16 %v347_v15 }
  0x97   :  { %v401_v18 = vunpack.c.l.bf16 %v348_v14  ;;  %v402_v19 = vunpack.c.h.bf16 %v348_v14 }
  0x98   :  { %v467_v38 = vadd.f32 %v3059_v26, %v399_v24  ;;  %v468_v39 = vadd.f32 %v3061_v27, %v400_v25 }
  0x99   :  { %v469_v22 = vadd.f32 %v3051_v4, %v401_v18  ;;  %v470_v23 = vadd.f32 %v3053_v5, %v402_v19 }
  0x9a   :  { %v627_v46 = vmax.f32 %v467_v38, 0.0  ;;  %v628_v47 = vmax.f32 %v468_v39, 0.0 }
  0x9b   :  { %v259_v28 = vpop.f32.mrf.mxu2  ;;  %v308_v29 = vpop.f32.mrf.mxu3  ;;  %v629_v31 = vmax.f32 %v469_v22, 0.0  ;;  %v630_v32 = vmax.f32 %v470_v23, 0.0 }
  0x9c   :  { %v164_v30 = vpop.f32.mrf.mxu0  ;;  %v349_v33 = vpack.c.bf16 %v308_v29, %v259_v28  ;;  %v213_v34 = vpop.f32.mrf.mxu1 }
  0x9d   :  { %v350_v35 = vpack.c.bf16 %v213_v34, %v164_v30  ;;  %v3063_v36 = vpack.c.bf16 %v629_v31, %v625_v20  ;;  %v3065_v37 = vpack.c.bf16 %v630_v32, %v626_v21 }
  0x9e   :  { %v403_v40 = vunpack.c.l.bf16 %v349_v33  ;;  %v404_v41 = vunpack.c.h.bf16 %v349_v33 }
  0x9f   :  { %1369 = vmatmul.bf16.vlgmr.msrb.gmra.mxu0 %v3063_v36  ;;  %1418 = vmatmul.bf16.vlgmr.msrb.gmra.mxu1 %v3065_v37  ;;  %v405_v44 = vunpack.c.l.bf16 %v350_v35  ;;  %v406_v45 = vunpack.c.h.bf16 %v350_v35 }
  0xa0   :  { %v471_v42 = vadd.f32 %v3059_v26, %v403_v40  ;;  %v472_v43 = vadd.f32 %v3061_v27, %v404_v41 }
  0xa1   :  { %v473_v56 = vadd.f32 %v3051_v4, %v405_v44  ;;  %v474_v57 = vadd.f32 %v3053_v5, %v406_v45 }
  0xa2   :  { %v631_v49 = vmax.f32 %v471_v42, 0.0  ;;  %v632_v50 = vmax.f32 %v472_v43, 0.0 }
  0xa3   :  { %v262_v48 = vpop.f32.mrf.mxu2  ;;  %v311_v51 = vpop.f32.mrf.mxu3  ;;  %v633_v62 = vmax.f32 %v473_v56, 0.0  ;;  %v634_v63 = vmax.f32 %v474_v57, 0.0 }
  0xa4   :  { %v166_v52 = vpop.f32.mrf.mxu0  ;;  %v215_v53 = vpop.f32.mrf.mxu1  ;;  %v3073_v54 = vpack.c.bf16 %v631_v49, %v627_v46  ;;  %v3075_v55 = vpack.c.bf16 %v632_v50, %v628_v47  ;;  %v351_v59 = vpack.c.bf16 %v311_v51, %v262_v48 }
  0xa5   :  { %v352_v58 = vpack.c.bf16 %v215_v53, %v166_v52 }
  0xa6   :  { %1467 = vmatmul.bf16.vlgmr.msrb.gmra.mxu2 %v3073_v54  ;;  %1516 = vmatmul.bf16.vlgmr.msrb.gmra.mxu3 %v3075_v55  ;;  %v407_v2 = vunpack.c.l.bf16 %v351_v59  ;;  %v408_v3 = vunpack.c.h.bf16 %v351_v59 }
  0xa7   :  { %v409_v60 = vunpack.c.l.bf16 %v352_v58  ;;  %v410_v61 = vunpack.c.h.bf16 %v352_v58 }
  0xa8   :  { %v475_v16 = vadd.f32 %v3059_v26, %v407_v2  ;;  %v476_v17 = vadd.f32 %v3061_v27, %v408_v3 }
  0xa9   :  { %v477_v0 = vadd.f32 %v3051_v4, %v409_v60  ;;  %v478_v1 = vadd.f32 %v3053_v5, %v410_v61 }
  0xaa   :  { %v635_v24 = vmax.f32 %v475_v16, 0.0  ;;  %v636_v25 = vmax.f32 %v476_v17, 0.0 }
  0xab   :  { %v264_v6 = vpop.f32.mrf.mxu2  ;;  %v313_v7 = vpop.f32.mrf.mxu3  ;;  %v637_v9 = vmax.f32 %v477_v0, 0.0  ;;  %v638_v10 = vmax.f32 %v478_v1, 0.0 }
  0xac   :  { %v169_v8 = vpop.f32.mrf.mxu0  ;;  %v353_v11 = vpack.c.bf16 %v313_v7, %v264_v6  ;;  %v218_v12 = vpop.f32.mrf.mxu1 }
  0xad   :  { %v354_v13 = vpack.c.bf16 %v218_v12, %v169_v8  ;;  %v3083_v14 = vpack.c.bf16 %v637_v9, %v633_v62  ;;  %v3085_v15 = vpack.c.bf16 %v638_v10, %v634_v63 }
  0xae   :  { %v411_v18 = vunpack.c.l.bf16 %v353_v11  ;;  %v412_v19 = vunpack.c.h.bf16 %v353_v11 }
  0xaf   :  { %1374 = vmatmul.bf16.gmra.mxu0 %v3083_v14  ;;  %1423 = vmatmul.bf16.gmra.mxu1 %v3085_v15  ;;  %v413_v22 = vunpack.c.l.bf16 %v354_v13  ;;  %v414_v23 = vunpack.c.h.bf16 %v354_v13 }
  0xb0   :  { %v479_v20 = vadd.f32 %v3059_v26, %v411_v18  ;;  %v480_v21 = vadd.f32 %v3061_v27, %v412_v19 }
  0xb1   :  { %v481_v38 = vadd.f32 %v3051_v4, %v413_v22  ;;  %v482_v39 = vadd.f32 %v3053_v5, %v414_v23 }
  0xb2   :  { %v639_v29 = vmax.f32 %v479_v20, 0.0  ;;  %v640_v30 = vmax.f32 %v480_v21, 0.0 }
  0xb3   :  { %v267_v28 = vpop.f32.mrf.mxu2  ;;  %v316_v31 = vpop.f32.mrf.mxu3  ;;  %v641_v44 = vmax.f32 %v481_v38, 0.0  ;;  %v642_v45 = vmax.f32 %v482_v39, 0.0  ;;  %v2855_v39 = vld [vmem:[#allocation3 + $0x22c] sm:$0xf] }
  0xb4   :  { %v171_v32 = vpop.f32.mrf.mxu0  ;;  %v220_v33 = vpop.f32.mrf.mxu1  ;;  %v3093_v34 = vpack.c.bf16 %v639_v29, %v635_v24  ;;  %v3095_v35 = vpack.c.bf16 %v640_v30, %v636_v25  ;;  %v355_v41 = vpack.c.bf16 %v316_v31, %v267_v28 }
  0xb5   :  { %v356_v40 = vpack.c.bf16 %v220_v33, %v171_v32 }
  0xb6   :  { %1472 = vmatmul.bf16.gmra.mxu2 %v3093_v34  ;;  %1521 = vmatmul.bf16.gmra.mxu3 %v3095_v35  ;;  %v415_v48 = vunpack.c.l.bf16 %v355_v41  ;;  %v416_v49 = vunpack.c.h.bf16 %v355_v41 }
  0xb7   :  { %v417_v42 = vunpack.c.l.bf16 %v356_v40  ;;  %v418_v43 = vunpack.c.h.bf16 %v356_v40  ;;  %v2670_v40 = vld [vmem:[#allocation3 + $0x234] sm:$0xf0] }
  0xb8   :  { %v483_v62 = vadd.f32 %v3059_v26, %v415_v48  ;;  %v484_v63 = vadd.f32 %v3061_v27, %v416_v49 }
  0xb9   :  { %v485_v46 = vadd.f32 %v3051_v4, %v417_v42  ;;  %v486_v47 = vadd.f32 %v3053_v5, %v418_v43 }
  0xba   :  { %v643_v8 = vmax.f32 %v483_v62, 0.0  ;;  %v644_v9 = vmax.f32 %v484_v63, 0.0 }
  0xbb   :  { %v269_v50 = vpop.f32.mrf.mxu2  ;;  %v318_v51 = vpop.f32.mrf.mxu3  ;;  %v645_v53 = vmax.f32 %v485_v46, 0.0  ;;  %v646_v56 = vmax.f32 %v486_v47, 0.0  ;;  %v2879_v46 = vld [vmem:[#allocation3 + $0x2ec] sm:$0xf]  ;;  %v2766_v47 = vld [vmem:[#allocation3 + $0x2f4] sm:$0xf0] }
  0xbc   :  { %v174_v52 = vpop.f32.mrf.mxu0  ;;  %v357_v57 = vpack.c.bf16 %v318_v51, %v269_v50  ;;  %v223_v58 = vpop.f32.mrf.mxu1  ;;  %v2769_v50 = vor.u32 %v2879_v46, %v2766_v47 }
  0xbd   :  { %v358_v59 = vpack.c.bf16 %v223_v58, %v174_v52  ;;  %v3103_v60 = vpack.c.bf16 %v645_v53, %v641_v44  ;;  %v3105_v61 = vpack.c.bf16 %v646_v56, %v642_v45  ;;  %v2673_v45 = vor.u32 %v2855_v39, %v2670_v40 }
  0xbe   :  { %v419_v0 = vunpack.c.l.bf16 %v357_v57  ;;  %v420_v1 = vunpack.c.h.bf16 %v357_v57  ;;  %1704 = vmatpush.bf16.msra.mxu3 %v2769_v50  ;;  %v2876_v50 = vld [vmem:[#allocation3 + $0x2d4] sm:$0xf] }
  0xbf   :  { %1379 = vmatmul.bf16.gmra.mxu0 %v3103_v60  ;;  %1428 = vmatmul.bf16.gmra.mxu1 %v3105_v61  ;;  %v421_v6 = vunpack.c.l.bf16 %v358_v59  ;;  %v422_v7 = vunpack.c.h.bf16 %v358_v59 }
  0xc0   :  { %v487_v2 = vadd.f32 %v3059_v26, %v419_v0  ;;  %v488_v3 = vadd.f32 %v3061_v27, %v420_v1  ;;  %1655 = vmatpush.bf16.msra.mxu2 %v2673_v45  ;;  %v2807_v1 = vld [vmem:[#allocation3 + $0xac] sm:$0xf] }
  0xc1   :  { %v489_v17 = vadd.f32 %v3051_v4, %v421_v6  ;;  %v490_v21 = vadd.f32 %v3053_v5, %v422_v7 }
  0xc2   :  { %v647_v11 = vmax.f32 %v487_v2, 0.0  ;;  %v648_v12 = vmax.f32 %v488_v3, 0.0  ;;  %v2478_v2 = vld [vmem:[#allocation3 + $0xb4] sm:$0xf0]  ;;  %v2831_v3 = vld [vmem:[#allocation3 + $0x16c] sm:$0xf] }
  0xc3   :  { %v272_v10 = vpop.f32.mrf.mxu2  ;;  %v321_v13 = vpop.f32.mrf.mxu3  ;;  %v649_v28 = vmax.f32 %v489_v17, 0.0  ;;  %v650_v29 = vmax.f32 %v490_v21, 0.0 }
  0xc4   :  { %v176_v16 = vpop.f32.mrf.mxu0  ;;  %v225_v18 = vpop.f32.mrf.mxu1  ;;  %v3114_v19 = vpack.c.bf16 %v647_v11, %v643_v8  ;;  %v3116_v20 = vpack.c.bf16 %v648_v12, %v644_v9  ;;  %v359_v22 = vpack.c.bf16 %v321_v13, %v272_v10  ;;  %v2481_v8 = vor.u32 %v2807_v1, %v2478_v2  ;;  %v2574_v9 = vld [vmem:[#allocation3 + $0x174] sm:$0xf0] }
  0xc5   :  { %v360_v23 = vpack.c.bf16 %v225_v18, %v176_v16  ;;  %v2577_v16 = vor.u32 %v2831_v3, %v2574_v9  ;;  %v2466_v9 = vld [vmem:[#allocation3 + $0x9c] sm:$0xf0] }
  0xc6   :  { %1477 = vmatmul.bf16.gmra.mxu2 %v3114_v19  ;;  %1526 = vmatmul.bf16.gmra.mxu3 %v3116_v20  ;;  %v423_v30 = vunpack.c.l.bf16 %v359_v22  ;;  %v424_v33 = vunpack.c.h.bf16 %v359_v22 }
  0xc7   :  { %v425_v24 = vunpack.c.l.bf16 %v360_v23  ;;  %v426_v25 = vunpack.c.h.bf16 %v360_v23  ;;  %1557 = vmatpush.bf16.msra.mxu0 %v2481_v8  ;;  %1606 = vmatpush.bf16.msra.mxu1 %v2577_v16  ;;  %v2804_v8 = vld [vmem:[#allocation3 + $0x94] sm:$0xf] }
  0xc8   :  { %v491_v51 = vadd.f32 %v3059_v26, %v423_v30  ;;  %v492_v57 = vadd.f32 %v3061_v27, %v424_v33  ;;  %v2469_v16 = vor.u32 %v2804_v8, %v2466_v9 }
  0xc9   :  { %v493_v31 = vadd.f32 %v3051_v4, %v425_v24  ;;  %v494_v32 = vadd.f32 %v3053_v5, %v426_v25 }
  0xca   :  { %v651_v6 = vmax.f32 %v491_v51, 0.0  ;;  %v652_v10 = vmax.f32 %v492_v57, 0.0  ;;  %v2754_v51 = vld [vmem:[#allocation3 + $0x2dc] sm:$0xf0] }
  0xcb   :  { %v274_v38 = vpop.f32.mrf.mxu2  ;;  %v323_v41 = vpop.f32.mrf.mxu3  ;;  %v653_v43 = vmax.f32 %v493_v31, 0.0  ;;  %v654_v44 = vmax.f32 %v494_v32, 0.0  ;;  %1558 = vmatpush.bf16.msra.mxu0 %v2469_v16  ;;  %v2742_v16 = vld [vmem:[#allocation3 + $0x2c4] sm:$0xf0] }
  0xcc   :  { %v179_v42 = vpop.f32.mrf.mxu0  ;;  %v361_v48 = vpack.c.bf16 %v323_v41, %v274_v38  ;;  %v228_v49 = vpop.f32.mrf.mxu1 }
  0xcd   :  { %v362_v52 = vpack.c.bf16 %v228_v49, %v179_v42  ;;  %v3124_v53 = vpack.c.bf16 %v653_v43, %v649_v28  ;;  %v3126_v56 = vpack.c.bf16 %v654_v44, %v650_v29  ;;  %v2852_v43 = vld [vmem:[#allocation3 + $0x214] sm:$0xf]  ;;  %v2658_v44 = vld [vmem:[#allocation3 + $0x21c] sm:$0xf0] }
  0xce   :  { %v427_v58 = vunpack.c.l.bf16 %v361_v48  ;;  %v428_v59 = vunpack.c.h.bf16 %v361_v48  ;;  %v2661_v49 = vor.u32 %v2852_v43, %v2658_v44  ;;  %v2801_v43 = vld [vmem:[#allocation3 + $0x7c] sm:$0xf]  ;;  %v2454_v44 = vld [vmem:[#allocation3 + $0x84] sm:$0xf0] }
  0xcf   :  { %1384 = vmatmul.bf16.gmra.mxu0 %v3124_v53  ;;  %1433 = vmatmul.bf16.gmra.mxu1 %v3126_v56  ;;  %v429_v0 = vunpack.c.l.bf16 %v362_v52  ;;  %v430_v7 = vunpack.c.h.bf16 %v362_v52 }
  0xd0   :  { %v495_v62 = vadd.f32 %v3059_v26, %v427_v58  ;;  %v496_v63 = vadd.f32 %v3061_v27, %v428_v59  ;;  %v2757_v58 = vor.u32 %v2876_v50, %v2754_v51  ;;  %1656 = vmatpush.bf16.msra.mxu2 %v2661_v49  ;;  %v2457_v49 = vor.u32 %v2801_v43, %v2454_v44  ;;  %v2550_v50 = vld [vmem:[#allocation3 + $0x144] sm:$0xf0]  ;;  %v2795_v43 = vld [vmem:[#allocation3 + $0x4c] sm:$0xf]  ;;  %v2430_v44 = vld [vmem:[#allocation3 + $0x54] sm:$0xf0] }
  0xd1   :  { %v497_v21 = vadd.f32 %v3051_v4, %v429_v0  ;;  %v498_v25 = vadd.f32 %v3053_v5, %v430_v7 }
  0xd2   :  { %v655_v12 = vmax.f32 %v495_v62, 0.0  ;;  %v656_v13 = vmax.f32 %v496_v63, 0.0  ;;  %1705 = vmatpush.bf16.msra.mxu3 %v2757_v58  ;;  %1559 = vmatpush.bf16.msra.mxu0 %v2457_v49  ;;  %v2433_v49 = vor.u32 %v2795_v43, %v2430_v44  ;;  %v2867_v43 = vld [vmem:[#allocation3 + $0x28c] sm:$0xf] }
  0xd3   :  { %v277_v11 = vpop.f32.mrf.mxu2  ;;  %v326_v17 = vpop.f32.mrf.mxu3  ;;  %v657_v32 = vmax.f32 %v497_v21, 0.0  ;;  %v658_v33 = vmax.f32 %v498_v25, 0.0 }
  0xd4   :  { %v181_v18 = vpop.f32.mrf.mxu0  ;;  %v230_v22 = vpop.f32.mrf.mxu1  ;;  %v3134_v23 = vpack.c.bf16 %v655_v12, %v651_v6  ;;  %v3136_v24 = vpack.c.bf16 %v656_v13, %v652_v10  ;;  %v363_v28 = vpack.c.bf16 %v326_v17, %v277_v11  ;;  %v2828_v10 = vld [vmem:[#allocation3 + $0x154] sm:$0xf]  ;;  %v2562_v17 = vld [vmem:[#allocation3 + $0x15c] sm:$0xf0] }
  0xd5   :  { %v364_v29 = vpack.c.bf16 %v230_v22, %v181_v18 }
  0xd6   :  { %1482 = vmatmul.bf16.gmra.mxu2 %v3134_v23  ;;  %1531 = vmatmul.bf16.gmra.mxu3 %v3136_v24  ;;  %v431_v38 = vunpack.c.l.bf16 %v363_v28  ;;  %v432_v41 = vunpack.c.h.bf16 %v363_v28  ;;  %v2565_v28 = vor.u32 %v2828_v10, %v2562_v17 }
  0xd7   :  { %v433_v30 = vunpack.c.l.bf16 %v364_v29  ;;  %v434_v31 = vunpack.c.h.bf16 %v364_v29 }
  0xd8   :  { %v499_v59 = vadd.f32 %v3059_v26, %v431_v38  ;;  %v500_v1 = vadd.f32 %v3061_v27, %v432_v41  ;;  %1607 = vmatpush.bf16.msra.mxu1 %v2565_v28  ;;  %v2822_v28 = vld [vmem:[#allocation3 + $0x124] sm:$0xf] }
  0xd9   :  { %v501_v39 = vadd.f32 %v3051_v4, %v433_v30  ;;  %v502_v40 = vadd.f32 %v3053_v5, %v434_v31 }
  0xda   :  { %v659_v11 = vmax.f32 %v499_v59, 0.0  ;;  %v660_v18 = vmax.f32 %v500_v1, 0.0 }
  0xdb   :  { %v279_v42 = vpop.f32.mrf.mxu2  ;;  %v328_v45 = vpop.f32.mrf.mxu3  ;;  %v661_v47 = vmax.f32 %v501_v39, 0.0  ;;  %v662_v48 = vmax.f32 %v502_v40, 0.0 }
  0xdc   :  { %v184_v46 = vpop.f32.mrf.mxu0  ;;  %v365_v52 = vpack.c.bf16 %v328_v45, %v279_v42  ;;  %v233_v57 = vpop.f32.mrf.mxu1  ;;  %v2825_v45 = vld [vmem:[#allocation3 + $0x13c] sm:$0xf] }
  0xdd   :  { %v366_v62 = vpack.c.bf16 %v233_v57, %v184_v46  ;;  %v3144_v63 = vpack.c.bf16 %v661_v47, %v657_v32  ;;  %v3146_v0 = vpack.c.bf16 %v662_v48, %v658_v33 }
  0xde   :  { %v435_v2 = vunpack.c.l.bf16 %v365_v52  ;;  %v436_v3 = vunpack.c.h.bf16 %v365_v52  ;;  %v2553_v52 = vor.u32 %v2825_v45, %v2550_v50  ;;  %v2819_v45 = vld [vmem:[#allocation3 + $0x10c] sm:$0xf]  ;;  %v2526_v50 = vld [vmem:[#allocation3 + $0x114] sm:$0xf0] }
  0xdf   :  { %1389 = vmatmul.bf16.gmra.mxu0 %v3144_v63  ;;  %1438 = vmatmul.bf16.gmra.mxu1 %v3146_v0  ;;  %v437_v12 = vunpack.c.l.bf16 %v366_v62  ;;  %v438_v13 = vunpack.c.h.bf16 %v366_v62 }
  0xe0   :  { %v503_v6 = vadd.f32 %v3059_v26, %v435_v2  ;;  %v504_v7 = vadd.f32 %v3061_v27, %v436_v3  ;;  %v2849_v3 = vld [vmem:[#allocation3 + $0x1fc] sm:$0xf]  ;;  %1608 = vmatpush.bf16.msra.mxu1 %v2553_v52 }
  0xe1   :  { %v505_v39 = vadd.f32 %v3051_v4, %v437_v12  ;;  %v506_v40 = vadd.f32 %v3053_v5, %v438_v13  ;;  %v2873_v13 = vld [vmem:[#allocation3 + $0x2bc] sm:$0xf] }
  0xe2   :  { %v663_v22 = vmax.f32 %v503_v6, 0.0  ;;  %v664_v25 = vmax.f32 %v504_v7, 0.0  ;;  %v2646_v6 = vld [vmem:[#allocation3 + $0x204] sm:$0xf0] }
  0xe3   :  { %v282_v21 = vpop.f32.mrf.mxu2  ;;  %v331_v29 = vpop.f32.mrf.mxu3  ;;  %v665_v57 = vmax.f32 %v505_v39, 0.0  ;;  %v666_v58 = vmax.f32 %v506_v40, 0.0  ;;  %v2649_v12 = vor.u32 %v2849_v3, %v2646_v6  ;;  %v2538_v39 = vld [vmem:[#allocation3 + $0x12c] sm:$0xf0] }
  0xe4   :  { %v186_v30 = vpop.f32.mrf.mxu0  ;;  %v367_v31 = vpack.c.bf16 %v331_v29, %v282_v21  ;;  %v235_v32 = vpop.f32.mrf.mxu1  ;;  %v3153_v33 = vpack.c.bf16 %v663_v22, %v659_v11  ;;  %v3155_v38 = vpack.c.bf16 %v664_v25, %v660_v18  ;;  %v2745_v21 = vor.u32 %v2873_v13, %v2742_v16  ;;  %v2798_v22 = vld [vmem:[#allocation3 + $0x64] sm:$0xf]  ;;  %v2442_v25 = vld [vmem:[#allocation3 + $0x6c] sm:$0xf0]  ;;  %v2816_v13 = vld [vmem:[#allocation3 + $0xf4] sm:$0xf] }
  0xe5   :  { %v368_v41 = vpack.c.bf16 %v235_v32, %v186_v30  ;;  %1657 = vmatpush.bf16.msra.mxu2 %v2649_v12  ;;  %v2445_v32 = vor.u32 %v2798_v22, %v2442_v25  ;;  %v2730_v6 = vld [vmem:[#allocation3 + $0x2ac] sm:$0xf0]  ;;  %v2514_v16 = vld [vmem:[#allocation3 + $0xfc] sm:$0xf0] }
  0xe6   :  { %v439_v42 = vunpack.c.l.bf16 %v367_v31  ;;  %1487 = vmatmul.bf16.gmra.mxu2 %v3153_v33  ;;  %1536 = vmatmul.bf16.gmra.mxu3 %v3155_v38  ;;  %v440_v46 = vunpack.c.h.bf16 %v367_v31 }
  0xe7   :  { %v441_v47 = vunpack.c.l.bf16 %v368_v41  ;;  %v442_v48 = vunpack.c.h.bf16 %v368_v41  ;;  %1706 = vmatpush.bf16.msra.mxu3 %v2745_v21  ;;  %1560 = vmatpush.bf16.msra.mxu0 %v2445_v32 }
  0xe8   :  { %v3162_v51 = vadd.f32 %v3059_v26, %v439_v42  ;;  %v3168_v7 = vadd.f32 %v3061_v27, %v440_v46  ;;  %v2541_v42 = vor.u32 %v2822_v28, %v2538_v39  ;;  %v2517_v28 = vor.u32 %v2816_v13, %v2514_v16 }
  0xe9   :  { %v509_v59 = vadd.f32 %v3051_v4, %v441_v47  ;;  %v510_v62 = vadd.f32 %v3053_v5, %v442_v48 }
  0xea   :  { %v667_v1 = vmax.f32 %v3162_v51, 0.0  ;;  %v668_v46 = vmax.f32 %v3168_v7, 0.0  ;;  %1609 = vmatpush.bf16.msra.mxu1 %v2541_v42  ;;  %v2792_v7 = vld [vmem:[#allocation3 + $0x34] sm:$0xf]  ;;  %v2622_v42 = vld [vmem:[#allocation3 + $0x1d4] sm:$0xf0] }
  0xeb   :  { %v284_v2 = vpop.f32.mrf.mxu2  ;;  %v333_v8 = vpop.f32.mrf.mxu3  ;;  %v669_v10 = vmax.f32 %v509_v59, 0.0  ;;  %v670_v11 = vmax.f32 %v510_v62, 0.0  ;;  %v2846_v59 = vld [vmem:[#allocation3 + $0x1e4] sm:$0xf]  ;;  %v2634_v62 = vld [vmem:[#allocation3 + $0x1ec] sm:$0xf0]  ;;  %1561 = vmatpush.bf16.msra.mxu0 %v2433_v49 }
  0xec   :  { %v189_v9 = vpop.f32.mrf.mxu0  ;;  %v369_v17 = vpack.c.bf16 %v333_v8, %v284_v2  ;;  %v238_v18 = vpop.f32.mrf.mxu1  ;;  %v2870_v2 = vld [vmem:[#allocation3 + $0x2a4] sm:$0xf]  ;;  %v2637_v3 = vor.u32 %v2846_v59, %v2634_v62  ;;  %v2418_v8 = vld [vmem:[#allocation3 + $0x3c] sm:$0xf0]  ;;  %v2406_v51 = vld [vmem:[#allocation3 + $0x24] sm:$0xf0] }
  0xed   :  { %v370_v29 = vpack.c.bf16 %v238_v18, %v189_v9  ;;  %v3170_v30 = vpack.c.bf16 %v669_v10, %v665_v57  ;;  %v3172_v31 = vpack.c.bf16 %v670_v11, %v666_v58  ;;  %v2529_v58 = vor.u32 %v2819_v45, %v2526_v50  ;;  %v2789_v50 = vld [vmem:[#allocation3 + $0x1c] sm:$0xf]  ;;  %v2610_v59 = vld [vmem:[#allocation3 + $0x1bc] sm:$0xf0] }
  0xee   :  { %v443_v40 = vunpack.c.l.bf16 %v369_v17  ;;  %v444_v41 = vunpack.c.h.bf16 %v369_v17  ;;  %v2733_v12 = vor.u32 %v2870_v2, %v2730_v6  ;;  %1658 = vmatpush.bf16.msra.mxu2 %v2637_v3  ;;  %v2421_v25 = vor.u32 %v2792_v7, %v2418_v8  ;;  %v2864_v7 = vld [vmem:[#allocation3 + $0x274] sm:$0xf]  ;;  %v2706_v8 = vld [vmem:[#allocation3 + $0x27c] sm:$0xf0] }
  0xef   :  { %3470 = vst [vmem:[#allocation6_spill] sm:$0xff] %v3172_v31  ;;  %v445_v47 = vunpack.c.l.bf16 %v370_v29  ;;  %v446_v48 = vunpack.c.h.bf16 %v370_v29  ;;  %1394 = vmatmul.bf16.gmra.mxu0 %v3170_v30  ;;  %1443 = vmatmul.bf16.gmra.mxu1 %v3172_v31  ;;  %v2409_v3 = vor.u32 %v2789_v50, %v2406_v51  ;;  %v2861_v50 = vld [vmem:[#allocation3 + $0x25c] sm:$0xf] }
  0xf0   :  { %v511_v52 = vadd.f32 %v3059_v26, %v443_v40  ;;  %v512_v57 = vadd.f32 %v3061_v27, %v444_v41  ;;  %1610 = vmatpush.bf16.msra.mxu1 %v2529_v58  ;;  %v2843_v41 = vld [vmem:[#allocation3 + $0x1cc] sm:$0xf]  ;;  %1707 = vmatpush.bf16.msra.mxu3 %v2733_v12  ;;  %v2840_v58 = vld [vmem:[#allocation3 + $0x1b4] sm:$0xf]  ;;  %v2709_v12 = vor.u32 %v2864_v7, %v2706_v8  ;;  %v2858_v8 = vld [vmem:[#allocation3 + $0x244] sm:$0xf] }
  0xf1   :  { %v3180_v17 = vadd.f32 %v3051_v4, %v445_v47  ;;  %v3183_v18 = vadd.f32 %v3053_v5, %v446_v48  ;;  %v2625_v45 = vor.u32 %v2843_v41, %v2622_v42  ;;  %v2718_v47 = vld [vmem:[#allocation3 + $0x294] sm:$0xf0]  ;;  %1562 = vmatpush.bf16.msra.mxu0 %v2421_v25  ;;  %v2810_v41 = vld [vmem:[#allocation3 + $0xc4] sm:$0xf]  ;;  %v2490_v42 = vld [vmem:[#allocation3 + $0xcc] sm:$0xf0] }
  0xf2   :  { %v671_v10 = vmax.f32 %v511_v52, 0.0  ;;  %v672_v11 = vmax.f32 %v512_v57, 0.0  ;;  %v2721_v48 = vor.u32 %v2867_v43, %v2718_v47  ;;  %v2502_v57 = vld [vmem:[#allocation3 + $0xe4] sm:$0xf0]  ;;  %v2493_v47 = vor.u32 %v2810_v41, %v2490_v42 }
  0xf3   :  { %v287_v9 = vpop.f32.mrf.mxu2  ;;  %v336_v21 = vpop.f32.mrf.mxu3  ;;  %1659 = vmatpush.bf16.msra.mxu2 %v2625_v45  ;;  %v673_v62 = vmax.f32 %v3180_v17, 0.0  ;;  %v674_v2 = vmax.f32 %v3183_v18, 0.0  ;;  %v2394_v17 = vld [vmem:[#allocation3 + $0xc] sm:$0xf0] }
  0xf4   :  { %v191_v22 = vpop.f32.mrf.mxu0  ;;  %v3185_v29 = vpack.c.bf16 %v336_v21, %v287_v9  ;;  %v240_v32 = vpop.f32.mrf.mxu1  ;;  %v3189_v39 = vpack.c.bf16 %v671_v10, %v667_v1  ;;  %v3191_v40 = vpack.c.bf16 %v672_v11, %v668_v46  ;;  %v2813_v1 = vld [vmem:[#allocation3 + $0xdc] sm:$0xf]  ;;  %1611 = vmatpush.bf16.msra.mxu1 %v2517_v28  ;;  %1708 = vmatpush.bf16.msra.mxu3 %v2721_v48  ;;  %v2786_v21 = vld [vmem:[#allocation3 + $0x4] sm:$0xf] }
  0xf5   :  { %v372_v44 = vpack.c.bf16 %v240_v32, %v191_v22  ;;  %v2505_v6 = vor.u32 %v2813_v1, %v2502_v57  ;;  %v2613_v11 = vor.u32 %v2840_v58, %v2610_v59  ;;  %1563 = vmatpush.bf16.msra.mxu0 %v2409_v3  ;;  %v2397_v45 = vor.u32 %v2786_v21, %v2394_v17  ;;  %v2837_v48 = vld [vmem:[#allocation3 + $0x19c] sm:$0xf]  ;;  %v2834_v3 = vld [vmem:[#allocation3 + $0x184] sm:$0xf] }
  0xf6   :  { %3471 = vst [vmem:[#allocation7_spill] sm:$0xff] %v3191_v40  ;;  %1492 = vmatmul.bf16.gmra.mxu2 %v3189_v39  ;;  %1541 = vmatmul.bf16.gmra.mxu3 %v3191_v40  ;;  %v447_v46 = vunpack.c.l.bf16 %v3185_v29  ;;  %v448_v13 = vunpack.c.h.bf16 %v3185_v29  ;;  %v2598_v29 = vld [vmem:[#allocation3 + $0x1a4] sm:$0xf0] }
  0xf7   :  { %v449_v52 = vunpack.c.l.bf16 %v372_v44  ;;  %v450_v49 = vunpack.c.h.bf16 %v372_v44  ;;  %1660 = vmatpush.bf16.msra.mxu2 %v2613_v11 }
  0xf8   :  { %v515_v18 = vadd.f32 %v3059_v26, %v447_v46  ;;  %1612 = vmatpush.bf16.msra.mxu1 %v2505_v6  ;;  %1709 = vmatpush.bf16.msra.mxu3 %v2709_v12  ;;  %v516_v57 = vadd.f32 %v3061_v27, %v448_v13  ;;  %v2586_v6 = vld [vmem:[#allocation3 + $0x18c] sm:$0xf0] }
  0xf9   :  { %v517_v9 = vadd.f32 %v3051_v4, %v449_v52  ;;  %v518_v10 = vadd.f32 %v3053_v5, %v450_v49  ;;  %v2601_v52 = vor.u32 %v2837_v48, %v2598_v29  ;;  %v2694_v49 = vld [vmem:[#allocation3 + $0x264] sm:$0xf0]  ;;  %1564 = vmatpush.bf16.msra.mxu0 %v2397_v45  ;;  %v2589_v12 = vor.u32 %v2834_v3, %v2586_v6 }
  0xfa   :  { %v2697_v7 = vor.u32 %v2861_v50, %v2694_v49  ;;  %v676_v21 = vmax.f32 %v516_v57, 0.0 }
  0xfb   :  { %v289_v16 = vpop.f32.mrf.mxu2  ;;  %v338_v22 = vpop.f32.mrf.mxu3  ;;  %v677_v28 = vmax.f32 %v517_v9, 0.0  ;;  %v678_v32 = vmax.f32 %v518_v10, 0.0  ;;  %v2682_v9 = vld [vmem:[#allocation3 + $0x24c] sm:$0xf0]  ;;  %1661 = vmatpush.bf16.msra.mxu2 %v2601_v52 }
  0xfc   :  { %v194_v25 = vpop.f32.mrf.mxu0  ;;  %v373_v43 = vpack.c.bf16 %v338_v22, %v289_v16  ;;  %v243_v44 = vpop.f32.mrf.mxu1  ;;  %1613 = vmatpush.bf16.msra.mxu1 %v2493_v47  ;;  %1710 = vmatpush.bf16.msra.mxu3 %v2697_v7  ;;  %v2685_v13 = vor.u32 %v2858_v8, %v2682_v9  ;;  %v675_v16 = vmax.f32 %v515_v18, 0.0 }
  0xfd   :  { %v374_v51 = vpack.c.bf16 %v243_v44, %v194_v25  ;;  %v3202_v1 = vpack.c.bf16 %v677_v28, %v673_v62  ;;  %v3204_v46 = vpack.c.bf16 %v678_v32, %v674_v2 }
  0xfe   :  { %v451_v58 = vunpack.c.l.bf16 %v373_v43  ;;  %v452_v59 = vunpack.c.h.bf16 %v373_v43 }
  0xff   :  { %1399 = vmatmul.bf16.gmra.mxu0 %v3202_v1  ;;  %1448 = vmatmul.bf16.gmra.mxu1 %v3204_v46  ;;  %v453_v10 = vunpack.c.l.bf16 %v374_v51  ;;  %v454_v11 = vunpack.c.h.bf16 %v374_v51 }
 0x100   :  { %v519_v62 = vadd.f32 %v3059_v26, %v451_v58  ;;  %v520_v2 = vadd.f32 %v3061_v27, %v452_v59  ;;  %1662 = vmatpush.bf16.msra.mxu2 %v2589_v12  ;;  %1711 = vmatpush.bf16.msra.mxu3 %v2685_v13 }
 0x101   :  { %v521_v44 = vadd.f32 %v3051_v4, %v453_v10  ;;  %v522_v45 = vadd.f32 %v3053_v5, %v454_v11 }
 0x102   :  { %v679_v22 = vmax.f32 %v519_v62, 0.0  ;;  %v680_v25 = vmax.f32 %v520_v2, 0.0 }
 0x103   :  { %v292_v17 = vpop.f32.mrf.mxu2  ;;  %v341_v28 = vpop.f32.mrf.mxu3  ;;  %v681_v50 = vmax.f32 %v521_v44, 0.0  ;;  %v682_v51 = vmax.f32 %v522_v45, 0.0 }
 0x104   :  { %v196_v32 = vpop.f32.mrf.mxu0  ;;  %v245_v41 = vpop.f32.mrf.mxu1  ;;  %v3211_v42 = vpack.c.bf16 %v679_v22, %v675_v16  ;;  %v3213_v43 = vpack.c.bf16 %v680_v25, %v676_v21  ;;  %v375_v48 = vpack.c.bf16 %v341_v28, %v292_v17 }
 0x105   :  { %v376_v47 = vpack.c.bf16 %v245_v41, %v196_v32 }
 0x106   :  { %1497 = vmatmul.bf16.gmra.mxu2 %v3211_v42  ;;  %1546 = vmatmul.bf16.gmra.mxu3 %v3213_v43  ;;  %v455_v57 = vunpack.c.l.bf16 %v375_v48  ;;  %v456_v58 = vunpack.c.h.bf16 %v375_v48 }
 0x107   :  { %v457_v18 = vunpack.c.l.bf16 %v376_v47  ;;  %v458_v29 = vunpack.c.h.bf16 %v376_v47 }
 0x108   :  { %v523_v9 = vadd.f32 %v3059_v26, %v455_v57  ;;  %v524_v10 = vadd.f32 %v3061_v27, %v456_v58 }
 0x109   :  { %v525_v52 = vadd.f32 %v3051_v4, %v457_v18  ;;  %v526_v49 = vadd.f32 %v3053_v5, %v458_v29 }
 0x10a   :  { %v683_v13 = vmax.f32 %v523_v9, 0.0  ;;  %v684_v16 = vmax.f32 %v524_v10, 0.0 }
 0x10b   :  { %v294_v59 = vpop.f32.mrf.mxu2  ;;  %v343_v7 = vpop.f32.mrf.mxu3  ;;  %v685_v3 = vmax.f32 %v525_v52, 0.0  ;;  %v686_v6 = vmax.f32 %v526_v49, 0.0 }
 0x10c   :  { %v377_v8 = vpack.c.bf16 %v343_v7, %v294_v59 }
 0x10d   :  { %v3221_v62 = vpack.c.bf16 %v685_v3, %v681_v50  ;;  %v3223_v2 = vpack.c.bf16 %v686_v6, %v682_v51 }
 0x10e   :  { %v459_v11 = vunpack.c.l.bf16 %v377_v8  ;;  %v460_v12 = vunpack.c.h.bf16 %v377_v8 }
 0x10f   :  { %1404 = vmatmul.bf16.gmra.mxu0 %v3221_v62  ;;  %1453 = vmatmul.bf16.gmra.mxu1 %v3223_v2 }
 0x110   :  { %v527_v4 = vadd.f32 %v3059_v26, %v459_v11  ;;  %v528_v5 = vadd.f32 %v3061_v27, %v460_v12 }
 0x112   :  { %v687_v21 = vmax.f32 %v527_v4, 0.0  ;;  %v688_v17 = vmax.f32 %v528_v5, 0.0 }
 0x114   :  { %v3231_v22 = vpack.c.bf16 %v687_v21, %v683_v13  ;;  %v3233_v25 = vpack.c.bf16 %v688_v17, %v684_v16 }
 0x116   :  { %1502 = vmatmul.bf16.gmra.mxu2 %v3231_v22  ;;  %1551 = vmatmul.bf16.gmra.mxu3 %v3233_v25 }
 0x11c   :  { %v1370_v28 = vpop.f32.mrf.mxu0  ;;  %v1419_v32 = vpop.f32.mrf.mxu1 }
 0x11d   :  { %v1420_v41 = vadd.f32 %v1419_v32, %v1370_v28 }
 0x11f   :  { %1565 = vmatmul.bf16.vlgmr.msra.gmra.mxu0 %v3063_v36  ;;  %1614 = vmatmul.bf16.vlgmr.msra.gmra.mxu1 %v3065_v37 }
 0x124   :  { %v1372_v26 = vpop.f32.mrf.mxu0  ;;  %v1421_v27 = vpop.f32.mrf.mxu1 }
 0x125   :  { %v1422_v44 = vadd.f32 %v1421_v27, %v1372_v26  ;;  %v2857_v26 = vld [vmem:[#allocation3 + $0x238] sm:$0xf0] }
 0x126   :  { %1663 = vmatmul.bf16.vlgmr.msra.gmra.mxu2 %v3073_v54  ;;  %1712 = vmatmul.bf16.vlgmr.msra.gmra.mxu3 %v3075_v55 }
 0x129   :  { %v1468_v45 = vpop.f32.mrf.mxu2  ;;  %v1517_v47 = vpop.f32.mrf.mxu3 }
 0x12a   :  { %v1469_v48 = vadd.f32 %v1468_v45, %v1420_v41  ;;  %v2676_v41 = vld [vmem:[#allocation3 + $0x230] sm:$0xf] }
 0x12b   :  { %v2677_v27 = vor.u32 %v2857_v26, %v2676_v41  ;;  %v2854_v41 = vld [vmem:[#allocation3 + $0x220] sm:$0xf0] }
 0x12c   :  { %v3241_v18 = vadd.f32 %v1517_v47, %v1469_v48  ;;  %v1375_v29 = vpop.f32.mrf.mxu0  ;;  %v1424_v50 = vpop.f32.mrf.mxu1 }
 0x12d   :  { %v1425_v51 = vadd.f32 %v1424_v50, %v1375_v29  ;;  %1851 = vmatpush.bf16.msrb.mxu2 %v2677_v27 }
 0x12f   :  { %1570 = vmatmul.bf16.gmra.mxu0 %v3083_v14  ;;  %1619 = vmatmul.bf16.gmra.mxu1 %v3085_v15 }
 0x131   :  { %v1470_v52 = vpop.f32.mrf.mxu2  ;;  %v1519_v49 = vpop.f32.mrf.mxu3 }
 0x132   :  { %v1471_v57 = vadd.f32 %v1470_v52, %v1422_v44  ;;  %v2881_v52 = vld [vmem:[#allocation3 + $0x2f8] sm:$0xf0] }
 0x134   :  { %v3245_v58 = vadd.f32 %v1519_v49, %v1471_v57  ;;  %v1377_v59 = vpop.f32.mrf.mxu0  ;;  %v1426_v7 = vpop.f32.mrf.mxu1  ;;  %v2484_v49 = vld [vmem:[#allocation3 + $0xb0] sm:$0xf] }
 0x135   :  { %v1427_v3 = vadd.f32 %v1426_v7, %v1377_v59  ;;  %v2809_v7 = vld [vmem:[#allocation3 + $0xb8] sm:$0xf0] }
 0x136   :  { %1668 = vmatmul.bf16.gmra.mxu2 %v3093_v34  ;;  %1717 = vmatmul.bf16.gmra.mxu3 %v3095_v35 }
 0x139   :  { %v1473_v6 = vpop.f32.mrf.mxu2  ;;  %v1522_v8 = vpop.f32.mrf.mxu3 }
 0x13a   :  { %v1474_v9 = vadd.f32 %v1473_v6, %v1425_v51  ;;  %v2772_v51 = vld [vmem:[#allocation3 + $0x2f0] sm:$0xf]  ;;  %v2833_v6 = vld [vmem:[#allocation3 + $0x178] sm:$0xf0] }
 0x13b   :  { %v2773_v59 = vor.u32 %v2881_v52, %v2772_v51  ;;  %v2878_v51 = vld [vmem:[#allocation3 + $0x2e0] sm:$0xf0]  ;;  %v2472_v52 = vld [vmem:[#allocation3 + $0x98] sm:$0xf] }
 0x13c   :  { %v3249_v10 = vadd.f32 %v1522_v8, %v1474_v9  ;;  %v1380_v11 = vpop.f32.mrf.mxu0  ;;  %v1429_v12 = vpop.f32.mrf.mxu1  ;;  %v2485_v8 = vor.u32 %v2809_v7, %v2484_v49  ;;  %v2806_v7 = vld [vmem:[#allocation3 + $0xa0] sm:$0xf0] }
 0x13d   :  { %v1430_v4 = vadd.f32 %v1429_v12, %v1380_v11  ;;  %1900 = vmatpush.bf16.msrb.mxu3 %v2773_v59 }
 0x13e   :  { %1753 = vmatpush.bf16.msrb.mxu0 %v2485_v8  ;;  %v2473_v8 = vor.u32 %v2806_v7, %v2472_v52  ;;  %v2448_v7 = vld [vmem:[#allocation3 + $0x68] sm:$0xf] }
 0x13f   :  { %1575 = vmatmul.bf16.gmra.mxu0 %v3103_v60  ;;  %1624 = vmatmul.bf16.gmra.mxu1 %v3105_v61 }
 0x141   :  { %v1475_v5 = vpop.f32.mrf.mxu2  ;;  %v1524_v13 = vpop.f32.mrf.mxu3 }
 0x142   :  { %v1476_v16 = vadd.f32 %v1475_v5, %v1427_v3  ;;  %v2580_v3 = vld [vmem:[#allocation3 + $0x170] sm:$0xf]  ;;  %1754 = vmatpush.bf16.msrb.mxu0 %v2473_v8 }
 0x143   :  { %v2581_v9 = vor.u32 %v2833_v6, %v2580_v3  ;;  %v2568_v3 = vld [vmem:[#allocation3 + $0x158] sm:$0xf]  ;;  %v2830_v6 = vld [vmem:[#allocation3 + $0x160] sm:$0xf0] }
 0x144   :  { %v3253_v21 = vadd.f32 %v1524_v13, %v1476_v16  ;;  %v1382_v17 = vpop.f32.mrf.mxu0  ;;  %v1431_v28 = vpop.f32.mrf.mxu1 }
 0x145   :  { %v1432_v32 = vadd.f32 %v1431_v28, %v1382_v17  ;;  %1802 = vmatpush.bf16.msrb.mxu1 %v2581_v9  ;;  %v2664_v28 = vld [vmem:[#allocation3 + $0x218] sm:$0xf]  ;;  %v2569_v9 = vor.u32 %v2830_v6, %v2568_v3  ;;  %v2800_v3 = vld [vmem:[#allocation3 + $0x70] sm:$0xf0]  ;;  %v2544_v6 = vld [vmem:[#allocation3 + $0x128] sm:$0xf] }
 0x146   :  { %1673 = vmatmul.bf16.gmra.mxu2 %v3114_v19  ;;  %1722 = vmatmul.bf16.gmra.mxu3 %v3116_v20  ;;  %v2665_v26 = vor.u32 %v2854_v41, %v2664_v28  ;;  %v2652_v41 = vld [vmem:[#allocation3 + $0x200] sm:$0xf]  ;;  %v2449_v8 = vor.u32 %v2800_v3, %v2448_v7 }
 0x148   :  { %1852 = vmatpush.bf16.msrb.mxu2 %v2665_v26  ;;  %v2851_v26 = vld [vmem:[#allocation3 + $0x208] sm:$0xf0] }
 0x149   :  { %v1478_v44 = vpop.f32.mrf.mxu2  ;;  %v1527_v45 = vpop.f32.mrf.mxu3  ;;  %1803 = vmatpush.bf16.msrb.mxu1 %v2569_v9  ;;  %v2824_v9 = vld [vmem:[#allocation3 + $0x130] sm:$0xf0] }
 0x14a   :  { %v1479_v47 = vadd.f32 %v1478_v44, %v1430_v4 }
 0x14c   :  { %v3257_v48 = vadd.f32 %v1527_v45, %v1479_v47  ;;  %v1385_v29 = vpop.f32.mrf.mxu0  ;;  %v1434_v50 = vpop.f32.mrf.mxu1 }
 0x14d   :  { %v1435_v57 = vadd.f32 %v1434_v50, %v1385_v29  ;;  %v2760_v50 = vld [vmem:[#allocation3 + $0x2d8] sm:$0xf] }
 0x14e   :  { %v2761_v59 = vor.u32 %v2878_v51, %v2760_v50 }
 0x14f   :  { %1580 = vmatmul.bf16.gmra.mxu0 %v3124_v53  ;;  %1629 = vmatmul.bf16.gmra.mxu1 %v3126_v56 }
 0x150   :  { %1901 = vmatpush.bf16.msrb.mxu3 %v2761_v59 }
 0x151   :  { %v1480_v11 = vpop.f32.mrf.mxu2  ;;  %v1529_v12 = vpop.f32.mrf.mxu3 }
 0x152   :  { %v1481_v4 = vadd.f32 %v1480_v11, %v1432_v32 }
 0x154   :  { %v3261_v5 = vadd.f32 %v1529_v12, %v1481_v4  ;;  %v1387_v13 = vpop.f32.mrf.mxu0  ;;  %v1436_v16 = vpop.f32.mrf.mxu1 }
 0x155   :  { %v1437_v17 = vadd.f32 %v1436_v16, %v1387_v13 }
 0x156   :  { %1678 = vmatmul.bf16.gmra.mxu2 %v3134_v23  ;;  %1727 = vmatmul.bf16.gmra.mxu3 %v3136_v24 }
 0x159   :  { %v1483_v27 = vpop.f32.mrf.mxu2  ;;  %v1532_v44 = vpop.f32.mrf.mxu3 }
 0x15a   :  { %v1484_v45 = vadd.f32 %v1483_v27, %v1435_v57  ;;  %v2460_v27 = vld [vmem:[#allocation3 + $0x80] sm:$0xf] }
 0x15c   :  { %v3265_v47 = vadd.f32 %v1532_v44, %v1484_v45  ;;  %v1390_v29 = vpop.f32.mrf.mxu0  ;;  %v1439_v32 = vpop.f32.mrf.mxu1  ;;  %v2653_v44 = vor.u32 %v2851_v26, %v2652_v41  ;;  %v2803_v45 = vld [vmem:[#allocation3 + $0x88] sm:$0xf0]  ;;  %v2545_v41 = vor.u32 %v2824_v9, %v2544_v6  ;;  %v2872_v6 = vld [vmem:[#allocation3 + $0x2b0] sm:$0xf0] }
 0x15d   :  { %v1440_v49 = vadd.f32 %v1439_v32, %v1390_v29  ;;  %v2556_v29 = vld [vmem:[#allocation3 + $0x140] sm:$0xf]  ;;  %v2827_v32 = vld [vmem:[#allocation3 + $0x148] sm:$0xf0]  ;;  %v2461_v50 = vor.u32 %v2803_v45, %v2460_v27  ;;  %v2532_v45 = vld [vmem:[#allocation3 + $0x110] sm:$0xf] }
 0x15e   :  { %v2557_v51 = vor.u32 %v2827_v32, %v2556_v29  ;;  %1853 = vmatpush.bf16.msrb.mxu2 %v2653_v44  ;;  %v2436_v44 = vld [vmem:[#allocation3 + $0x50] sm:$0xf]  ;;  %v2821_v32 = vld [vmem:[#allocation3 + $0x118] sm:$0xf0] }
 0x15f   :  { %1585 = vmatmul.bf16.gmra.mxu0 %v3144_v63  ;;  %1634 = vmatmul.bf16.gmra.mxu1 %v3146_v0 }
 0x160   :  { %1755 = vmatpush.bf16.msrb.mxu0 %v2461_v50  ;;  %1804 = vmatpush.bf16.msrb.mxu1 %v2557_v51  ;;  %v2533_v50 = vor.u32 %v2821_v32, %v2532_v45  ;;  %v2640_v51 = vld [vmem:[#allocation3 + $0x1e8] sm:$0xf]  ;;  %v2628_v32 = vld [vmem:[#allocation3 + $0x1d0] sm:$0xf] }
 0x161   :  { %v1485_v57 = vpop.f32.mrf.mxu2  ;;  %v1534_v11 = vpop.f32.mrf.mxu3 }
 0x162   :  { %v1486_v12 = vadd.f32 %v1485_v57, %v1437_v17 }
 0x164   :  { %v3269_v4 = vadd.f32 %v1534_v11, %v1486_v12  ;;  %v1392_v13 = vpop.f32.mrf.mxu0  ;;  %v1441_v16 = vpop.f32.mrf.mxu1  ;;  %1756 = vmatpush.bf16.msrb.mxu0 %v2449_v8  ;;  %1805 = vmatpush.bf16.msrb.mxu1 %v2545_v41  ;;  %v2818_v41 = vld [vmem:[#allocation3 + $0x100] sm:$0xf0] }
 0x165   :  { %v1442_v28 = vadd.f32 %v1441_v16, %v1392_v13  ;;  %v2748_v13 = vld [vmem:[#allocation3 + $0x2c0] sm:$0xf]  ;;  %v2875_v16 = vld [vmem:[#allocation3 + $0x2c8] sm:$0xf0] }
 0x166   :  { %1683 = vmatmul.bf16.gmra.mxu2 %v3153_v33  ;;  %1732 = vmatmul.bf16.gmra.mxu3 %v3155_v38  ;;  %v2749_v27 = vor.u32 %v2875_v16, %v2748_v13  ;;  %v2520_v13 = vld [vmem:[#allocation3 + $0xf8] sm:$0xf] }
 0x167   :  { %v2521_v45 = vor.u32 %v2818_v41, %v2520_v13 }
 0x168   :  { %1902 = vmatpush.bf16.msrb.mxu3 %v2749_v27  ;;  %1806 = vmatpush.bf16.msrb.mxu1 %v2533_v50 }
 0x169   :  { %v1488_v52 = vpop.f32.mrf.mxu2  ;;  %v1537_v17 = vpop.f32.mrf.mxu3 }
 0x16a   :  { %v1489_v59 = vadd.f32 %v1488_v52, %v1440_v49  ;;  %v2797_v49 = vld [vmem:[#allocation3 + $0x58] sm:$0xf0]  ;;  %v2848_v52 = vld [vmem:[#allocation3 + $0x1f0] sm:$0xf0] }
 0x16b   :  { %v2437_v29 = vor.u32 %v2797_v49, %v2436_v44  ;;  %v2641_v3 = vor.u32 %v2848_v52, %v2640_v51  ;;  %v2724_v51 = vld [vmem:[#allocation3 + $0x290] sm:$0xf] }
 0x16c   :  { %v3273_v57 = vadd.f32 %v1537_v17, %v1489_v59  ;;  %v1395_v11 = vpop.f32.mrf.mxu0  ;;  %v1444_v12 = vpop.f32.mrf.mxu1  ;;  %v2736_v17 = vld [vmem:[#allocation3 + $0x2a8] sm:$0xf]  ;;  %1807 = vmatpush.bf16.msrb.mxu1 %v2521_v45 }
 0x16d   :  { %v1445_v26 = vadd.f32 %v1444_v12, %v1395_v11  ;;  %1757 = vmatpush.bf16.msrb.mxu0 %v2437_v29  ;;  %v2737_v9 = vor.u32 %v2872_v6, %v2736_v17  ;;  %v2424_v11 = vld [vmem:[#allocation3 + $0x38] sm:$0xf]  ;;  %v2794_v12 = vld [vmem:[#allocation3 + $0x40] sm:$0xf0]  ;;  %1854 = vmatpush.bf16.msrb.mxu2 %v2641_v3  ;;  %v2869_v29 = vld [vmem:[#allocation3 + $0x298] sm:$0xf0] }
 0x16e   :  { %v2425_v16 = vor.u32 %v2794_v12, %v2424_v11  ;;  %v2725_v50 = vor.u32 %v2869_v29, %v2724_v51  ;;  %v2412_v17 = vld [vmem:[#allocation3 + $0x20] sm:$0xf]  ;;  %v2815_v6 = vld [vmem:[#allocation3 + $0xe8] sm:$0xf0]  ;;  %v2842_v11 = vld [vmem:[#allocation3 + $0x1c0] sm:$0xf0] }
 0x16f   :  { %1590 = vmatmul.bf16.gmra.mxu0 %v3170_v30  ;;  %1639 = vmatmul.bf16.gmra.mxu1 %v3172_v31  ;;  %v2845_v31 = vld [vmem:[#allocation3 + $0x1d8] sm:$0xf0]  ;;  %v2508_v3 = vld [vmem:[#allocation3 + $0xe0] sm:$0xf]  ;;  %v2712_v12 = vld [vmem:[#allocation3 + $0x278] sm:$0xf] }
 0x170   :  { %1903 = vmatpush.bf16.msrb.mxu3 %v2737_v9  ;;  %v2616_v9 = vld [vmem:[#allocation3 + $0x1b8] sm:$0xf]  ;;  %v2400_v51 = vld [vmem:[#allocation3 + $0x8] sm:$0xf]  ;;  %v2788_v29 = vld [vmem:[#allocation3 + $0x10] sm:$0xf0] }
 0x171   :  { %v1490_v59 = vpop.f32.mrf.mxu2  ;;  %v1539_v7 = vpop.f32.mrf.mxu3  ;;  %1758 = vmatpush.bf16.msrb.mxu0 %v2425_v16  ;;  %v2617_v41 = vor.u32 %v2842_v11, %v2616_v9  ;;  %v2812_v16 = vld [vmem:[#allocation3 + $0xd0] sm:$0xf0]  ;;  %v2700_v9 = vld [vmem:[#allocation3 + $0x260] sm:$0xf] }
 0x172   :  { %v1491_v8 = vadd.f32 %v1490_v59, %v1442_v28  ;;  %v2629_v28 = vor.u32 %v2845_v31, %v2628_v32  ;;  %v2791_v59 = vld [vmem:[#allocation3 + $0x28] sm:$0xf0] }
 0x174   :  { %v3277_v44 = vadd.f32 %v1539_v7, %v1491_v8  ;;  %v1397_v27 = vpop.f32.mrf.mxu0  ;;  %v1446_v49 = vpop.f32.mrf.mxu1  ;;  %v2413_v7 = vor.u32 %v2791_v59, %v2412_v17  ;;  %1855 = vmatpush.bf16.msrb.mxu2 %v2629_v28  ;;  %1904 = vmatpush.bf16.msrb.mxu3 %v2725_v50  ;;  %v2509_v8 = vor.u32 %v2815_v6, %v2508_v3  ;;  %v2604_v3 = vld [vmem:[#allocation3 + $0x1a0] sm:$0xf]  ;;  %v2839_v6 = vld [vmem:[#allocation3 + $0x1a8] sm:$0xf0] }
 0x175   :  { %v1447_v52 = vadd.f32 %v1446_v49, %v1397_v27  ;;  %v2866_v27 = vld [vmem:[#allocation3 + $0x280] sm:$0xf0]  ;;  %v2401_v17 = vor.u32 %v2788_v29, %v2400_v51 }
 0x176   :  { %1688 = vmatmul.bf16.gmra.mxu2 %v3189_v39  ;;  %1737 = vmatmul.bf16.gmra.mxu3 %v3191_v40  ;;  %v2713_v32 = vor.u32 %v2866_v27, %v2712_v12  ;;  %v2496_v40 = vld [vmem:[#allocation3 + $0xc8] sm:$0xf]  ;;  %v2863_v12 = vld [vmem:[#allocation3 + $0x268] sm:$0xf0] }
 0x177   :  { %1759 = vmatpush.bf16.msrb.mxu0 %v2413_v7  ;;  %1808 = vmatpush.bf16.msrb.mxu1 %v2509_v8  ;;  %v2497_v59 = vor.u32 %v2812_v16, %v2496_v40  ;;  %v2592_v7 = vld [vmem:[#allocation3 + $0x188] sm:$0xf]  ;;  %v2836_v8 = vld [vmem:[#allocation3 + $0x190] sm:$0xf0] }
 0x178   :  { %1856 = vmatpush.bf16.msrb.mxu2 %v2617_v41  ;;  %1905 = vmatpush.bf16.msrb.mxu3 %v2713_v32  ;;  %v2593_v40 = vor.u32 %v2836_v8, %v2592_v7 }
 0x179   :  { %v1493_v31 = vpop.f32.mrf.mxu2  ;;  %v1542_v13 = vpop.f32.mrf.mxu3 }
 0x17a   :  { %v1494_v49 = vadd.f32 %v1493_v31, %v1445_v26  ;;  %v2605_v26 = vor.u32 %v2839_v6, %v2604_v3  ;;  %v2701_v31 = vor.u32 %v2863_v12, %v2700_v9 }
 0x17b   :  { %1760 = vmatpush.bf16.msrb.mxu0 %v2401_v17  ;;  %1809 = vmatpush.bf16.msrb.mxu1 %v2497_v59 }
 0x17c   :  { %v3281_v45 = vadd.f32 %v1542_v13, %v1494_v49  ;;  %v1400_v28 = vpop.f32.mrf.mxu0  ;;  %v1449_v50 = vpop.f32.mrf.mxu1  ;;  %v2688_v13 = vld [vmem:[#allocation3 + $0x248] sm:$0xf]  ;;  %1857 = vmatpush.bf16.msrb.mxu2 %v2605_v26  ;;  %1906 = vmatpush.bf16.msrb.mxu3 %v2701_v31  ;;  %v2860_v49 = vld [vmem:[#allocation3 + $0x250] sm:$0xf0] }
 0x17d   :  { %v1450_v11 = vadd.f32 %v1449_v50, %v1400_v28  ;;  %v2689_v51 = vor.u32 %v2860_v49, %v2688_v13 }
 0x17f   :  { %1595 = vmatmul.bf16.gmra.mxu0 %v3202_v1  ;;  %1644 = vmatmul.bf16.gmra.mxu1 %v3204_v46 }
 0x180   :  { %1858 = vmatpush.bf16.msrb.mxu2 %v2593_v40  ;;  %1907 = vmatpush.bf16.msrb.mxu3 %v2689_v51 }
 0x181   :  { %v1495_v41 = vpop.f32.mrf.mxu2  ;;  %v1544_v27 = vpop.f32.mrf.mxu3 }
 0x182   :  { %v1496_v32 = vadd.f32 %v1495_v41, %v1447_v52 }
 0x184   :  { %v3285_v29 = vadd.f32 %v1544_v27, %v1496_v32  ;;  %v1402_v16 = vpop.f32.mrf.mxu0  ;;  %v1451_v28 = vpop.f32.mrf.mxu1 }
 0x185   :  { %v1452_v50 = vadd.f32 %v1451_v28, %v1402_v16 }
 0x186   :  { %1693 = vmatmul.bf16.gmra.mxu2 %v3211_v42  ;;  %1742 = vmatmul.bf16.gmra.mxu3 %v3213_v43 }
 0x189   :  { %v1498_v17 = vpop.f32.mrf.mxu2  ;;  %v1547_v59 = vpop.f32.mrf.mxu3 }
 0x18a   :  { %v1499_v3 = vadd.f32 %v1498_v17, %v1450_v11 }
 0x18c   :  { %v3289_v6 = vadd.f32 %v1547_v59, %v1499_v3  ;;  %v1405_v9 = vpop.f32.mrf.mxu0  ;;  %v1454_v26 = vpop.f32.mrf.mxu1 }
 0x18d   :  { %v1455_v52 = vadd.f32 %v1454_v26, %v1405_v9 }
 0x18f   :  { %1600 = vmatmul.bf16.gmra.mxu0 %v3221_v62  ;;  %1649 = vmatmul.bf16.gmra.mxu1 %v3223_v2 }
 0x191   :  { %v1500_v12 = vpop.f32.mrf.mxu2  ;;  %v1549_v31 = vpop.f32.mrf.mxu3 }
 0x192   :  { %v1501_v7 = vadd.f32 %v1500_v12, %v1452_v50 }
 0x194   :  { %v3293_v8 = vadd.f32 %v1549_v31, %v1501_v7  ;;  %v1407_v13 = vpop.f32.mrf.mxu0  ;;  %v1456_v41 = vpop.f32.mrf.mxu1 }
 0x195   :  { %v1457_v27 = vadd.f32 %v1456_v41, %v1407_v13  ;;  %v1985_v13 = vld [vmem:[#allocation1 + $0x9] sm:$0xff] }
 0x196   :  { %1698 = vmatmul.bf16.gmra.mxu2 %v3231_v22  ;;  %1747 = vmatmul.bf16.gmra.mxu3 %v3233_v25 }
 0x199   :  { %v1503_v11 = vpop.f32.mrf.mxu2  ;;  %v1552_v40 = vpop.f32.mrf.mxu3 }
 0x19a   :  { %v1504_v49 = vadd.f32 %v1503_v11, %v1455_v52  ;;  %v1984_v52 = vld [vmem:[#allocation1] sm:$0xff] }
 0x19c   :  { %v3297_v32 = vadd.f32 %v1552_v40, %v1504_v49  ;;  %v1566_v51 = vpop.f32.mrf.mxu0  ;;  %v1615_v16 = vpop.f32.mrf.mxu1  ;;  %v1990_v49 = vpack.i.b16 %v1985_v13, %v1985_v13 }
 0x19d   :  { %v1616_v28 = vadd.f32 %v1615_v16, %v1566_v51 }
 0x19e   :  { %v1992_v16 = vperm.slane %v1990_v49, 0 }
 0x19f   :  { %1761 = vmatmul.bf16.vlgmr.msrb.gmra.mxu0 %v3063_v36  ;;  %1810 = vmatmul.bf16.vlgmr.msrb.gmra.mxu1 %v3065_v37  ;;  %v1987_v36 = vpack.i.b16 %v1984_v52, %v1984_v52 }
 0x1a1   :  { %v1505_v50 = vpop.f32.mrf.mxu2  ;;  %v1554_v17 = vpop.f32.mrf.mxu3 }
 0x1a2   :  { %v1506_v59 = vadd.f32 %v1505_v50, %v1457_v27 }
 0x1a4   :  { %v3301_v3 = vadd.f32 %v1554_v17, %v1506_v59  ;;  %v1568_v9 = vpop.f32.mrf.mxu0  ;;  %v1617_v26 = vpop.f32.mrf.mxu1 }
 0x1a5   :  { %v1618_v12 = vadd.f32 %v1617_v26, %v1568_v9 }
 0x1a6   :  { %1859 = vmatmul.bf16.vlgmr.msrb.gmra.mxu2 %v3073_v54  ;;  %1908 = vmatmul.bf16.vlgmr.msrb.gmra.mxu3 %v3075_v55  ;;  %v1989_v54 = vperm.slane %v1987_v36, 0 }
 0x1a8   :  { %v3308_v9 = vunpack.c.l.bf16 %v1989_v54 }
 0x1a9   :  { %v1664_v31 = vpop.f32.mrf.mxu2  ;;  %v1713_v7 = vpop.f32.mrf.mxu3 }
 0x1aa   :  { %v1665_v41 = vadd.f32 %v1664_v31, %v1616_v28 }
 0x1ac   :  { %v1714_v11 = vadd.f32 %v1713_v7, %v1665_v41  ;;  %v1571_v37 = vpop.f32.mrf.mxu0  ;;  %v1620_v40 = vpop.f32.mrf.mxu1  ;;  %v3310_v7 = vunpack.c.l.bf16 %v1992_v16 }
 0x1ad   :  { %v1621_v27 = vadd.f32 %v1620_v40, %v1571_v37 }
 0x1ae   :  { %v1949_v51 = vpack.c.bf16 %v1714_v11, %v3241_v18 }
 0x1af   :  { %1766 = vmatmul.bf16.gmra.mxu0 %v3083_v14  ;;  %1815 = vmatmul.bf16.gmra.mxu1 %v3085_v15 }
 0x1b0   :  { %v1996_v59 = vunpack.c.l.bf16 %v1949_v51  ;;  %v1997_v28 = vunpack.c.h.bf16 %v1949_v51 }
 0x1b1   :  { %v1666_v55 = vpop.f32.mrf.mxu2  ;;  %v1715_v50 = vpop.f32.mrf.mxu3 }
 0x1b2   :  { %v1667_v17 = vadd.f32 %v1666_v55, %v1618_v12  ;;  %v2047_v14 = vadd.f32 %v3308_v9, %v1996_v59  ;;  %v2048_v41 = vadd.f32 %v3310_v7, %v1997_v28 }
 0x1b4   :  { %v1716_v26 = vadd.f32 %v1715_v50, %v1667_v17  ;;  %v1573_v52 = vpop.f32.mrf.mxu0  ;;  %v1622_v31 = vpop.f32.mrf.mxu1  ;;  %v2175_v51 = vmax.f32 %v2047_v14, 0.0  ;;  %v2176_v55 = vmax.f32 %v2048_v41, 0.0 }
 0x1b5   :  { %v1623_v13 = vadd.f32 %v1622_v31, %v1573_v52 }
 0x1b6   :  { %v1951_v18 = vpack.c.bf16 %v1716_v26, %v3245_v58  ;;  %1864 = vmatmul.bf16.gmra.mxu2 %v3093_v34  ;;  %1913 = vmatmul.bf16.gmra.mxu3 %v3095_v35 }
 0x1b8   :  { %v1999_v15 = vunpack.c.l.bf16 %v1951_v18  ;;  %v2000_v12 = vunpack.c.h.bf16 %v1951_v18 }
 0x1b9   :  { %v1669_v36 = vpop.f32.mrf.mxu2  ;;  %v1718_v11 = vpop.f32.mrf.mxu3 }
 0x1ba   :  { %v1670_v37 = vadd.f32 %v1669_v36, %v1621_v27  ;;  %v2050_v40 = vadd.f32 %v3308_v9, %v1999_v15  ;;  %v2051_v49 = vadd.f32 %v3310_v7, %v2000_v12 }
 0x1bc   :  { %v1719_v54 = vadd.f32 %v1718_v11, %v1670_v37  ;;  %v1576_v58 = vpop.f32.mrf.mxu0  ;;  %v1625_v16 = vpop.f32.mrf.mxu1  ;;  %v2178_v34 = vmax.f32 %v2050_v40, 0.0  ;;  %v2179_v35 = vmax.f32 %v2051_v49, 0.0 }
 0x1bd   :  { %v1626_v50 = vadd.f32 %v1625_v16, %v1576_v58 }
 0x1be   :  { %v1953_v17 = vpack.c.bf16 %v1719_v54, %v3249_v10  ;;  %v3320_v59 = vpack.c.bf16 %v2178_v34, %v2175_v51  ;;  %v3322_v28 = vpack.c.bf16 %v2179_v35, %v2176_v55 }
 0x1bf   :  { %1771 = vmatmul.bf16.gmra.mxu0 %v3103_v60  ;;  %1820 = vmatmul.bf16.gmra.mxu1 %v3105_v61 }
 0x1c0   :  { %v2002_v31 = vunpack.c.l.bf16 %v1953_v17  ;;  %v2003_v18 = vunpack.c.h.bf16 %v1953_v17 }
 0x1c1   :  { %v1671_v27 = vpop.f32.mrf.mxu2  ;;  %v1720_v26 = vpop.f32.mrf.mxu3 }
 0x1c2   :  { %v1672_v52 = vadd.f32 %v1671_v27, %v1623_v13  ;;  %v2053_v10 = vadd.f32 %v3308_v9, %v2002_v31  ;;  %v2054_v61 = vadd.f32 %v3310_v7, %v2003_v18 }
 0x1c4   :  { %v1721_v14 = vadd.f32 %v1720_v26, %v1672_v52  ;;  %v1578_v15 = vpop.f32.mrf.mxu0  ;;  %v1627_v12 = vpop.f32.mrf.mxu1  ;;  %v2181_v54 = vmax.f32 %v2053_v10, 0.0  ;;  %v2182_v34 = vmax.f32 %v2054_v61, 0.0 }
 0x1c5   :  { %v1628_v41 = vadd.f32 %v1627_v12, %v1578_v15 }
 0x1c6   :  { %v1955_v36 = vpack.c.bf16 %v1721_v14, %v3253_v21  ;;  %1869 = vmatmul.bf16.gmra.mxu2 %v3114_v19  ;;  %1918 = vmatmul.bf16.gmra.mxu3 %v3116_v20 }
 0x1c8   :  { %v2005_v60 = vunpack.c.l.bf16 %v1955_v36  ;;  %v2006_v11 = vunpack.c.h.bf16 %v1955_v36 }
 0x1c9   :  { %v1674_v37 = vpop.f32.mrf.mxu2  ;;  %v1723_v13 = vpop.f32.mrf.mxu3 }
 0x1ca   :  { %v1675_v40 = vadd.f32 %v1674_v37, %v1626_v50  ;;  %v2056_v49 = vadd.f32 %v3308_v9, %v2005_v60  ;;  %v2057_v51 = vadd.f32 %v3310_v7, %v2006_v11 }
 0x1cc   :  { %v1724_v58 = vadd.f32 %v1723_v13, %v1675_v40  ;;  %v1581_v21 = vpop.f32.mrf.mxu0  ;;  %v1630_v16 = vpop.f32.mrf.mxu1  ;;  %v2184_v19 = vmax.f32 %v2056_v49, 0.0  ;;  %v2185_v20 = vmax.f32 %v2057_v51, 0.0 }
 0x1cd   :  { %v1631_v55 = vadd.f32 %v1630_v16, %v1581_v21 }
 0x1ce   :  { %v1957_v35 = vpack.c.bf16 %v1724_v58, %v3257_v48  ;;  %v3334_v17 = vpack.c.bf16 %v2184_v19, %v2181_v54  ;;  %v3336_v27 = vpack.c.bf16 %v2185_v20, %v2182_v34 }
 0x1cf   :  { %1776 = vmatmul.bf16.gmra.mxu0 %v3124_v53  ;;  %1825 = vmatmul.bf16.gmra.mxu1 %v3126_v56 }
 0x1d0   :  { %v2008_v31 = vunpack.c.l.bf16 %v1957_v35  ;;  %v2009_v18 = vunpack.c.h.bf16 %v1957_v35 }
 0x1d1   :  { %v1676_v50 = vpop.f32.mrf.mxu2  ;;  %v1725_v26 = vpop.f32.mrf.mxu3 }
 0x1d2   :  { %v1677_v52 = vadd.f32 %v1676_v50, %v1628_v41  ;;  %v2059_v48 = vadd.f32 %v3308_v9, %v2008_v31  ;;  %v2060_v56 = vadd.f32 %v3310_v7, %v2009_v18 }
 0x1d4   :  { %v1726_v14 = vadd.f32 %v1725_v26, %v1677_v52  ;;  %v1583_v15 = vpop.f32.mrf.mxu0  ;;  %v1632_v12 = vpop.f32.mrf.mxu1  ;;  %v2187_v40 = vmax.f32 %v2059_v48, 0.0  ;;  %v2188_v54 = vmax.f32 %v2060_v56, 0.0 }
 0x1d5   :  { %v1633_v36 = vadd.f32 %v1632_v12, %v1583_v15 }
 0x1d6   :  { %v1959_v10 = vpack.c.bf16 %v1726_v14, %v3261_v5  ;;  %1874 = vmatmul.bf16.gmra.mxu2 %v3134_v23  ;;  %1923 = vmatmul.bf16.gmra.mxu3 %v3136_v24 }
 0x1d8   :  { %v2011_v53 = vunpack.c.l.bf16 %v1959_v10  ;;  %v2012_v60 = vunpack.c.h.bf16 %v1959_v10 }
 0x1d9   :  { %v1679_v11 = vpop.f32.mrf.mxu2  ;;  %v1728_v41 = vpop.f32.mrf.mxu3 }
 0x1da   :  { %v1680_v61 = vadd.f32 %v1679_v11, %v1631_v55  ;;  %v2062_v37 = vadd.f32 %v3308_v9, %v2011_v53  ;;  %v2063_v13 = vadd.f32 %v3310_v7, %v2012_v60 }
 0x1dc   :  { %v1729_v49 = vadd.f32 %v1728_v41, %v1680_v61  ;;  %v1586_v5 = vpop.f32.mrf.mxu0  ;;  %v1635_v51 = vpop.f32.mrf.mxu1  ;;  %v2190_v23 = vmax.f32 %v2062_v37, 0.0  ;;  %v2191_v24 = vmax.f32 %v2063_v13, 0.0  ;;  %v3472_v13 = vld [vmem:[#allocation6_spill] sm:$0xff] }
 0x1dd   :  { %v1636_v58 = vadd.f32 %v1635_v51, %v1586_v5 }
 0x1de   :  { %v1961_v21 = vpack.c.bf16 %v1729_v49, %v3265_v47  ;;  %v3348_v16 = vpack.c.bf16 %v2190_v23, %v2187_v40  ;;  %v3350_v19 = vpack.c.bf16 %v2191_v24, %v2188_v54 }
 0x1df   :  { %1781 = vmatmul.bf16.gmra.mxu0 %v3144_v63  ;;  %1830 = vmatmul.bf16.gmra.mxu1 %v3146_v0 }
 0x1e0   :  { %v2014_v35 = vunpack.c.l.bf16 %v1961_v21  ;;  %v2015_v50 = vunpack.c.h.bf16 %v1961_v21 }
 0x1e1   :  { %v1681_v34 = vpop.f32.mrf.mxu2  ;;  %v1730_v20 = vpop.f32.mrf.mxu3 }
 0x1e2   :  { %v1682_v55 = vadd.f32 %v1681_v34, %v1633_v36  ;;  %v2065_v47 = vadd.f32 %v3308_v9, %v2014_v35  ;;  %v2066_v0 = vadd.f32 %v3310_v7, %v2015_v50 }
 0x1e4   :  { %v1731_v26 = vadd.f32 %v1730_v20, %v1682_v55  ;;  %v1588_v52 = vpop.f32.mrf.mxu0  ;;  %v1637_v31 = vpop.f32.mrf.mxu1  ;;  %v2193_v53 = vmax.f32 %v2065_v47, 0.0  ;;  %v2194_v11 = vmax.f32 %v2066_v0, 0.0 }
 0x1e5   :  { %v1638_v40 = vadd.f32 %v1637_v31, %v1588_v52 }
 0x1e6   :  { %v1963_v18 = vpack.c.bf16 %v1731_v26, %v3269_v4  ;;  %1879 = vmatmul.bf16.gmra.mxu2 %v3153_v33  ;;  %1928 = vmatmul.bf16.gmra.mxu3 %v3155_v38 }
 0x1e8   :  { %v2017_v14 = vunpack.c.l.bf16 %v1963_v18  ;;  %v2018_v63 = vunpack.c.h.bf16 %v1963_v18 }
 0x1e9   :  { %v1684_v15 = vpop.f32.mrf.mxu2  ;;  %v1733_v12 = vpop.f32.mrf.mxu3 }
 0x1ea   :  { %v1685_v36 = vadd.f32 %v1684_v15, %v1636_v58  ;;  %v2068_v10 = vadd.f32 %v3308_v9, %v2017_v14  ;;  %v2069_v48 = vadd.f32 %v3310_v7, %v2018_v63 }
 0x1ec   :  { %v1734_v60 = vadd.f32 %v1733_v12, %v1685_v36  ;;  %v1591_v4 = vpop.f32.mrf.mxu0  ;;  %v1640_v56 = vpop.f32.mrf.mxu1  ;;  %v2196_v33 = vmax.f32 %v2068_v10, 0.0  ;;  %v2197_v38 = vmax.f32 %v2069_v48, 0.0 }
 0x1ee   :  { %v1965_v41 = vpack.c.bf16 %v1734_v60, %v3273_v57  ;;  %v3362_v61 = vpack.c.bf16 %v2196_v33, %v2193_v53  ;;  %v3364_v37 = vpack.c.bf16 %v2197_v38, %v2194_v11  ;;  %v3473_v57 = vld [vmem:[#allocation7_spill] sm:$0xff] }
 0x1ef   :  { %1786 = vmatmul.bf16.gmra.mxu0 %v3170_v30  ;;  %1835 = vmatmul.bf16.gmra.mxu1 %v3472_v13  ;;  %v1641_v30 = vadd.f32 %v1640_v56, %v1591_v4 }
 0x1f0   :  { %v2020_v23 = vunpack.c.l.bf16 %v1965_v41  ;;  %v2021_v54 = vunpack.c.h.bf16 %v1965_v41 }
 0x1f1   :  { %v1686_v49 = vpop.f32.mrf.mxu2  ;;  %v1735_v5 = vpop.f32.mrf.mxu3 }
 0x1f2   :  { %v1687_v51 = vadd.f32 %v1686_v49, %v1638_v40  ;;  %v2071_v20 = vadd.f32 %v3308_v9, %v2020_v23  ;;  %v2072_v50 = vadd.f32 %v3310_v7, %v2021_v54 }
 0x1f4   :  { %v1736_v24 = vadd.f32 %v1735_v5, %v1687_v51  ;;  %v1593_v58 = vpop.f32.mrf.mxu0  ;;  %v1642_v21 = vpop.f32.mrf.mxu1  ;;  %v2199_v14 = vmax.f32 %v2071_v20, 0.0  ;;  %v2200_v15 = vmax.f32 %v2072_v50, 0.0 }
 0x1f5   :  { %v1643_v53 = vadd.f32 %v1642_v21, %v1593_v58 }
 0x1f6   :  { %v1967_v34 = vpack.c.bf16 %v1736_v24, %v3277_v44  ;;  %1884 = vmatmul.bf16.gmra.mxu2 %v3189_v39  ;;  %1933 = vmatmul.bf16.gmra.mxu3 %v3473_v57 }
 0x1f8   :  { %v2023_v55 = vunpack.c.l.bf16 %v1967_v34  ;;  %v2024_v35 = vunpack.c.h.bf16 %v1967_v34 }
 0x1f9   :  { %v1689_v26 = vpop.f32.mrf.mxu2  ;;  %v1738_v52 = vpop.f32.mrf.mxu3 }
 0x1fa   :  { %v1690_v31 = vadd.f32 %v1689_v26, %v1641_v30  ;;  %v2074_v18 = vadd.f32 %v3308_v9, %v2023_v55  ;;  %v2075_v47 = vadd.f32 %v3310_v7, %v2024_v35 }
 0x1fc   :  { %v1739_v44 = vadd.f32 %v1738_v52, %v1690_v31  ;;  %v1596_v63 = vpop.f32.mrf.mxu0  ;;  %v1645_v39 = vpop.f32.mrf.mxu1  ;;  %v2202_v0 = vmax.f32 %v2074_v18, 0.0  ;;  %v2203_v12 = vmax.f32 %v2075_v47, 0.0 }
 0x1fe   :  { %v3375_v36 = vpack.c.bf16 %v2202_v0, %v2199_v14  ;;  %v3377_v10 = vpack.c.bf16 %v2203_v12, %v2200_v15  ;;  %v1969_v48 = vpack.c.bf16 %v1739_v44, %v3281_v45 }
 0x1ff   :  { %1791 = vmatmul.bf16.gmra.mxu0 %v3202_v1  ;;  %1840 = vmatmul.bf16.gmra.mxu1 %v3204_v46  ;;  %v1646_v1 = vadd.f32 %v1645_v39, %v1596_v63 }
 0x200   :  { %v2026_v33 = vunpack.c.l.bf16 %v1969_v48  ;;  %v2027_v11 = vunpack.c.h.bf16 %v1969_v48 }
 0x201   :  { %v1691_v60 = vpop.f32.mrf.mxu2  ;;  %v1740_v4 = vpop.f32.mrf.mxu3 }
 0x202   :  { %v1692_v56 = vadd.f32 %v1691_v60, %v1643_v53  ;;  %v2077_v45 = vadd.f32 %v3308_v9, %v2026_v33  ;;  %v2078_v5 = vadd.f32 %v3310_v7, %v2027_v11 }
 0x204   :  { %v1741_v38 = vadd.f32 %v1740_v4, %v1692_v56  ;;  %v1598_v41 = vpop.f32.mrf.mxu0  ;;  %v1647_v13 = vpop.f32.mrf.mxu1  ;;  %v2205_v21 = vmax.f32 %v2077_v45, 0.0 }
 0x205   :  { %v1648_v50 = vadd.f32 %v1647_v13, %v1598_v41 }
 0x206   :  { %v1971_v40 = vpack.c.bf16 %v1741_v38, %v3285_v29  ;;  %1889 = vmatmul.bf16.gmra.mxu2 %v3211_v42  ;;  %1938 = vmatmul.bf16.gmra.mxu3 %v3213_v43  ;;  %v2206_v43 = vmax.f32 %v2078_v5, 0.0 }
 0x208   :  { %v2029_v49 = vunpack.c.l.bf16 %v1971_v40  ;;  %v2030_v46 = vunpack.c.h.bf16 %v1971_v40 }
 0x209   :  { %v1694_v51 = vpop.f32.mrf.mxu2  ;;  %v1743_v23 = vpop.f32.mrf.mxu3 }
 0x20a   :  { %v1695_v54 = vadd.f32 %v1694_v51, %v1646_v1  ;;  %v2080_v24 = vadd.f32 %v3308_v9, %v2029_v49  ;;  %v2081_v58 = vadd.f32 %v3310_v7, %v2030_v46 }
 0x20c   :  { %v1744_v29 = vadd.f32 %v1743_v23, %v1695_v54  ;;  %v1601_v34 = vpop.f32.mrf.mxu0  ;;  %v1650_v42 = vpop.f32.mrf.mxu1  ;;  %v2208_v57 = vmax.f32 %v2080_v24, 0.0  ;;  %v2209_v20 = vmax.f32 %v2081_v58, 0.0 }
 0x20e   :  { %v3389_v30 = vpack.c.bf16 %v2208_v57, %v2205_v21  ;;  %v3391_v55 = vpack.c.bf16 %v2209_v20, %v2206_v43  ;;  %v1973_v35 = vpack.c.bf16 %v1744_v29, %v3289_v6  ;;  %v1986_v20 = vld [vmem:[#allocation1 + $0x12] sm:$0xff] }
 0x20f   :  { %1796 = vmatmul.bf16.gmra.mxu0 %v3221_v62  ;;  %1845 = vmatmul.bf16.gmra.mxu1 %v3223_v2  ;;  %v1651_v62 = vadd.f32 %v1650_v42, %v1601_v34 }
 0x210   :  { %v2032_v18 = vunpack.c.l.bf16 %v1973_v35  ;;  %v2033_v47 = vunpack.c.h.bf16 %v1973_v35 }
 0x211   :  { %v1696_v26 = vpop.f32.mrf.mxu2  ;;  %v1745_v52 = vpop.f32.mrf.mxu3 }
 0x212   :  { %v1697_v31 = vadd.f32 %v1696_v26, %v1648_v50  ;;  %v2083_v6 = vadd.f32 %v3308_v9, %v2032_v18  ;;  %v2084_v15 = vadd.f32 %v3310_v7, %v2033_v47  ;;  %v1993_v18 = vpack.i.b16 %v1986_v20, %v1986_v20 }
 0x214   :  { %v1746_v14 = vadd.f32 %v1745_v52, %v1697_v31  ;;  %v1603_v44 = vpop.f32.mrf.mxu0  ;;  %v1652_v63 = vpop.f32.mrf.mxu1  ;;  %v2211_v56 = vmax.f32 %v2083_v6, 0.0 }
 0x215   :  { %v1653_v1 = vadd.f32 %v1652_v63, %v1603_v44 }
 0x216   :  { %v1975_v39 = vpack.c.bf16 %v1746_v14, %v3293_v8  ;;  %1894 = vmatmul.bf16.gmra.mxu2 %v3231_v22  ;;  %1943 = vmatmul.bf16.gmra.mxu3 %v3233_v25  ;;  %v2212_v25 = vmax.f32 %v2084_v15, 0.0  ;;  %v1995_v15 = vperm.slane %v1993_v18, 0 }
 0x218   :  { %v2035_v0 = vunpack.c.l.bf16 %v1975_v39  ;;  %v2036_v2 = vunpack.c.h.bf16 %v1975_v39 }
 0x219   :  { %v1699_v12 = vpop.f32.mrf.mxu2  ;;  %v1748_v48 = vpop.f32.mrf.mxu3 }
 0x21a   :  { %v1700_v53 = vadd.f32 %v1699_v12, %v1651_v62  ;;  %v2086_v60 = vadd.f32 %v3308_v9, %v2035_v0  ;;  %v2087_v4 = vadd.f32 %v3310_v7, %v2036_v2 }
 0x21c   :  { %v1749_v8 = vadd.f32 %v1748_v48, %v1700_v53  ;;  %v1762_v33 = vpop.f32.mrf.mxu0  ;;  %v1811_v22 = vpop.f32.mrf.mxu1  ;;  %v2214_v11 = vmax.f32 %v2086_v60, 0.0  ;;  %v2215_v38 = vmax.f32 %v2087_v4, 0.0  ;;  %v3409_v53 = vunpack.c.l.bf16 %v1995_v15 }
 0x21d   :  { %v1812_v41 = vadd.f32 %v1811_v22, %v1762_v33 }
 0x21e   :  { %v2241_v13 = vpack.c.bf16 %v2214_v11, %v2211_v56  ;;  %v2242_v40 = vpack.c.bf16 %v2215_v38, %v2212_v25  ;;  %v1977_v45 = vpack.c.bf16 %v1749_v8, %v3297_v32 }
 0x220   :  { %v2038_v51 = vunpack.c.l.bf16 %v1977_v45  ;;  %v2039_v23 = vunpack.c.h.bf16 %v1977_v45 }
 0x221   :  { %v1701_v49 = vpop.f32.mrf.mxu2  ;;  %v1750_v46 = vpop.f32.mrf.mxu3 }
 0x222   :  { %v1702_v5 = vadd.f32 %v1701_v49, %v1653_v1  ;;  %v2089_v34 = vadd.f32 %v3308_v9, %v2038_v51  ;;  %v2090_v42 = vadd.f32 %v3310_v7, %v2039_v23 }
 0x224   :  { %v1751_v54 = vadd.f32 %v1750_v46, %v1702_v5  ;;  %v1764_v24 = vpop.f32.mrf.mxu0  ;;  %v1813_v58 = vpop.f32.mrf.mxu1  ;;  %v2217_v31 = vmax.f32 %v2089_v34, 0.0  ;;  %v2218_v47 = vmax.f32 %v2090_v42, 0.0 }
 0x225   :  { %v1814_v21 = vadd.f32 %v1813_v58, %v1764_v24 }
 0x226   :  { %v1979_v29 = vpack.c.bf16 %v1751_v54, %v3301_v3 }
 0x228   :  { %v2041_v57 = vunpack.c.l.bf16 %v1979_v29  ;;  %v2042_v43 = vunpack.c.h.bf16 %v1979_v29 }
 0x229   :  { %v1860_v32 = vpop.f32.mrf.mxu2  ;;  %v1909_v35 = vpop.f32.mrf.mxu3 }
 0x22a   :  { %v2092_v50 = vadd.f32 %v3308_v9, %v2041_v57  ;;  %v2093_v26 = vadd.f32 %v3310_v7, %v2042_v43  ;;  %v1861_v52 = vadd.f32 %v1860_v32, %v1812_v41 }
 0x22c   :  { %v2220_v14 = vmax.f32 %v2092_v50, 0.0  ;;  %v2221_v44 = vmax.f32 %v2093_v26, 0.0  ;;  %v1910_v3 = vadd.f32 %v1909_v35, %v1861_v52  ;;  %v1767_v63 = vpop.f32.mrf.mxu0  ;;  %v1816_v39 = vpop.f32.mrf.mxu1 }
 0x22d   :  { %v1817_v6 = vadd.f32 %v1816_v39, %v1767_v63 }
 0x22e   :  { %v2244_v62 = vpack.c.bf16 %v2220_v14, %v2217_v31  ;;  %v2245_v0 = vpack.c.bf16 %v2221_v44, %v2218_v47  ;;  %v1950_v2 = vpack.c.bf16 %v1910_v3, %v1910_v3 }
 0x230   :  { %2263 = vmatpush.bf16.xpose.msra.mxu0 %v2244_v62  ;;  %2276 = vmatpush.bf16.xpose.msra.mxu1 %v2245_v0  ;;  %v1998_v7 = vunpack.c.l.bf16 %v1950_v2 }
 0x231   :  { %v1862_v12 = vpop.f32.mrf.mxu2  ;;  %v1911_v9 = vpop.f32.mrf.mxu3 }
 0x232   :  { %v1863_v48 = vadd.f32 %v1862_v12, %v1814_v21  ;;  %v2049_v22 = vadd.f32 %v3409_v53, %v1998_v7 }
 0x234   :  { %v1912_v60 = vadd.f32 %v1911_v9, %v1863_v48  ;;  %v1769_v4 = vpop.f32.mrf.mxu0  ;;  %v1818_v56 = vpop.f32.mrf.mxu1  ;;  %v2177_v1 = vmax.f32 %v2049_v22, 0.0 }
 0x235   :  { %v1819_v8 = vadd.f32 %v1818_v56, %v1769_v4 }
 0x236   :  { %v1952_v33 = vpack.c.bf16 %v1912_v60, %v1912_v60 }
 0x238   :  { %v2001_v11 = vunpack.c.l.bf16 %v1952_v33  ;;  %2264 = vmatpush.bf16.xpose.msra.mxu0 %v2241_v13  ;;  %2277 = vmatpush.bf16.xpose.msra.mxu1 %v2242_v40 }
 0x239   :  { %v1865_v25 = vpop.f32.mrf.mxu2  ;;  %v1914_v38 = vpop.f32.mrf.mxu3 }
 0x23a   :  { %v2052_v41 = vadd.f32 %v3409_v53, %v2001_v11  ;;  %v1866_v45 = vadd.f32 %v1865_v25, %v1817_v6 }
 0x23c   :  { %v2180_v49 = vmax.f32 %v2052_v41, 0.0  ;;  %v1915_v46 = vadd.f32 %v1914_v38, %v1866_v45  ;;  %v1772_v5 = vpop.f32.mrf.mxu0  ;;  %v1821_v51 = vpop.f32.mrf.mxu1 }
 0x23d   :  { %v1822_v23 = vadd.f32 %v1821_v51, %v1772_v5 }
 0x23e   :  { %v3413_v54 = vpack.c.bf16 %v2180_v49, %v2177_v1  ;;  %v1954_v24 = vpack.c.bf16 %v1915_v46, %v1915_v46 }
 0x240   :  { %2265 = vmatpush.bf16.xpose.msra.mxu0 %v3389_v30  ;;  %2278 = vmatpush.bf16.xpose.msra.mxu1 %v3391_v55  ;;  %v2004_v21 = vunpack.c.l.bf16 %v1954_v24 }
 0x241   :  { %v1867_v13 = vpop.f32.mrf.mxu2  ;;  %v1916_v40 = vpop.f32.mrf.mxu3 }
 0x242   :  { %v1868_v58 = vadd.f32 %v1867_v13, %v1819_v8  ;;  %v2055_v20 = vadd.f32 %v3409_v53, %v2004_v21 }
 0x244   :  { %v1917_v29 = vadd.f32 %v1916_v40, %v1868_v58  ;;  %v1774_v34 = vpop.f32.mrf.mxu0  ;;  %v1823_v42 = vpop.f32.mrf.mxu1  ;;  %v2183_v26 = vmax.f32 %v2055_v20, 0.0 }
 0x245   :  { %v1824_v57 = vadd.f32 %v1823_v42, %v1774_v34 }
 0x246   :  { %v1956_v43 = vpack.c.bf16 %v1917_v29, %v1917_v29 }
 0x248   :  { %v2007_v32 = vunpack.c.l.bf16 %v1956_v43  ;;  %2266 = vmatpush.bf16.xpose.msra.mxu0 %v3375_v36  ;;  %2279 = vmatpush.bf16.xpose.msra.mxu1 %v3377_v10 }
 0x249   :  { %v1870_v35 = vpop.f32.mrf.mxu2  ;;  %v1919_v30 = vpop.f32.mrf.mxu3 }
 0x24a   :  { %v2058_v55 = vadd.f32 %v3409_v53, %v2007_v32  ;;  %v1871_v50 = vadd.f32 %v1870_v35, %v1822_v23 }
 0x24c   :  { %v2186_v52 = vmax.f32 %v2058_v55, 0.0  ;;  %v1920_v31 = vadd.f32 %v1919_v30, %v1871_v50  ;;  %v1777_v18 = vpop.f32.mrf.mxu0  ;;  %v1826_v47 = vpop.f32.mrf.mxu1 }
 0x24d   :  { %v1827_v14 = vadd.f32 %v1826_v47, %v1777_v18 }
 0x24e   :  { %v3421_v44 = vpack.c.bf16 %v2186_v52, %v2183_v26  ;;  %v1958_v3 = vpack.c.bf16 %v1920_v31, %v1920_v31 }
 0x250   :  { %2267 = vmatpush.bf16.xpose.msra.mxu0 %v3362_v61  ;;  %2280 = vmatpush.bf16.xpose.msra.mxu1 %v3364_v37  ;;  %v2010_v39 = vunpack.c.l.bf16 %v1958_v3 }
 0x251   :  { %v1872_v36 = vpop.f32.mrf.mxu2  ;;  %v1921_v10 = vpop.f32.mrf.mxu3 }
 0x252   :  { %v1873_v63 = vadd.f32 %v1872_v36, %v1824_v57  ;;  %v2061_v12 = vadd.f32 %v3409_v53, %v2010_v39 }
 0x254   :  { %v1922_v6 = vadd.f32 %v1921_v10, %v1873_v63  ;;  %v1779_v62 = vpop.f32.mrf.mxu0  ;;  %v1828_v0 = vpop.f32.mrf.mxu1  ;;  %v2189_v60 = vmax.f32 %v2061_v12, 0.0 }
 0x255   :  { %v1829_v2 = vadd.f32 %v1828_v0, %v1779_v62 }
 0x256   :  { %v1960_v15 = vpack.c.bf16 %v1922_v6, %v1922_v6 }
 0x258   :  { %v2013_v9 = vunpack.c.l.bf16 %v1960_v15  ;;  %2268 = vmatpush.bf16.xpose.msra.mxu0 %v3348_v16  ;;  %2281 = vmatpush.bf16.xpose.msra.mxu1 %v3350_v19 }
 0x259   :  { %v1875_v48 = vpop.f32.mrf.mxu2  ;;  %v1924_v61 = vpop.f32.mrf.mxu3 }
 0x25a   :  { %v2064_v37 = vadd.f32 %v3409_v53, %v2013_v9  ;;  %v1876_v7 = vadd.f32 %v1875_v48, %v1827_v14 }
 0x25c   :  { %v2192_v4 = vmax.f32 %v2064_v37, 0.0  ;;  %v1925_v56 = vadd.f32 %v1924_v61, %v1876_v7  ;;  %v1782_v8 = vpop.f32.mrf.mxu0  ;;  %v1831_v33 = vpop.f32.mrf.mxu1 }
 0x25d   :  { %v1832_v22 = vadd.f32 %v1831_v33, %v1782_v8 }
 0x25e   :  { %v3429_v11 = vpack.c.bf16 %v2192_v4, %v2189_v60  ;;  %v1962_v25 = vpack.c.bf16 %v1925_v56, %v1925_v56 }
 0x260   :  { %2269 = vmatpush.bf16.xpose.msra.mxu0 %v3334_v17  ;;  %2282 = vmatpush.bf16.xpose.msra.mxu1 %v3336_v27  ;;  %v2016_v41 = vunpack.c.l.bf16 %v1962_v25 }
 0x261   :  { %v1877_v16 = vpop.f32.mrf.mxu2  ;;  %v1926_v19 = vpop.f32.mrf.mxu3 }
 0x262   :  { %v1878_v38 = vadd.f32 %v1877_v16, %v1829_v2  ;;  %v2067_v51 = vadd.f32 %v3409_v53, %v2016_v41 }
 0x264   :  { %v1927_v45 = vadd.f32 %v1926_v19, %v1878_v38  ;;  %v1784_v1 = vpop.f32.mrf.mxu0  ;;  %v1833_v49 = vpop.f32.mrf.mxu1  ;;  %v2195_v40 = vmax.f32 %v2067_v51, 0.0 }
 0x265   :  { %v1834_v46 = vadd.f32 %v1833_v49, %v1784_v1 }
 0x266   :  { %v1964_v5 = vpack.c.bf16 %v1927_v45, %v1927_v45 }
 0x268   :  { %v2019_v23 = vunpack.c.l.bf16 %v1964_v5  ;;  %2270 = vmatpush.bf16.xpose.msra.mxu0 %v3320_v59  ;;  %2283 = vmatpush.bf16.xpose.msra.mxu1 %v3322_v28 }
 0x269   :  { %v1880_v24 = vpop.f32.mrf.mxu2  ;;  %v1929_v17 = vpop.f32.mrf.mxu3 }
 0x26a   :  { %v2070_v27 = vadd.f32 %v3409_v53, %v2019_v23  ;;  %v1881_v13 = vadd.f32 %v1880_v24, %v1832_v22 }
 0x26c   :  { %v2198_v58 = vmax.f32 %v2070_v27, 0.0  ;;  %v1930_v21 = vadd.f32 %v1929_v17, %v1881_v13  ;;  %v1787_v29 = vpop.f32.mrf.mxu0  ;;  %v1836_v34 = vpop.f32.mrf.mxu1 }
 0x26d   :  { %v1837_v24 = vadd.f32 %v1836_v34, %v1787_v29 }
 0x26e   :  { %v3437_v42 = vpack.c.bf16 %v2198_v58, %v2195_v40  ;;  %v1966_v57 = vpack.c.bf16 %v1930_v21, %v1930_v21 }
 0x270   :  { %v2022_v35 = vunpack.c.l.bf16 %v1966_v57 }
 0x271   :  { %v1882_v43 = vpop.f32.mrf.mxu2  ;;  %v1931_v20 = vpop.f32.mrf.mxu3 }
 0x272   :  { %v1883_v32 = vadd.f32 %v1882_v43, %v1834_v46  ;;  %v2073_v50 = vadd.f32 %v3409_v53, %v2022_v35 }
 0x274   :  { %v1932_v59 = vadd.f32 %v1931_v20, %v1883_v32  ;;  %v1789_v30 = vpop.f32.mrf.mxu0  ;;  %v1838_v28 = vpop.f32.mrf.mxu1  ;;  %v2201_v47 = vmax.f32 %v2073_v50, 0.0 }
 0x275   :  { %v1839_v46 = vadd.f32 %v1838_v28, %v1789_v30 }
 0x276   :  { %v1968_v55 = vpack.c.bf16 %v1932_v59, %v1932_v59 }
 0x278   :  { %v2025_v26 = vunpack.c.l.bf16 %v1968_v55 }
 0x279   :  { %v1885_v52 = vpop.f32.mrf.mxu2  ;;  %v1934_v31 = vpop.f32.mrf.mxu3 }
 0x27a   :  { %v2076_v18 = vadd.f32 %v3409_v53, %v2025_v26  ;;  %v1886_v40 = vadd.f32 %v1885_v52, %v1837_v24 }
 0x27c   :  { %v2204_v14 = vmax.f32 %v2076_v18, 0.0  ;;  %v1792_v3 = vpop.f32.mrf.mxu0  ;;  %v1841_v36 = vpop.f32.mrf.mxu1  ;;  %v1935_v35 = vadd.f32 %v1934_v31, %v1886_v40 }
 0x27d   :  { %v1842_v22 = vadd.f32 %v1841_v36, %v1792_v3 }
 0x27e   :  { %v3441_v10 = vpack.c.bf16 %v2204_v14, %v2201_v47  ;;  %v1970_v34 = vpack.c.bf16 %v1935_v35, %v1935_v35 }
 0x280   :  { %v2028_v47 = vunpack.c.l.bf16 %v1970_v34 }
 0x281   :  { %v1887_v63 = vpop.f32.mrf.mxu2  ;;  %v1936_v39 = vpop.f32.mrf.mxu3 }
 0x282   :  { %v1888_v17 = vadd.f32 %v1887_v63, %v1839_v46  ;;  %v2079_v31 = vadd.f32 %v3409_v53, %v2028_v47 }
 0x284   :  { %v1794_v6 = vpop.f32.mrf.mxu0  ;;  %v1843_v62 = vpop.f32.mrf.mxu1  ;;  %v1937_v43 = vadd.f32 %v1936_v39, %v1888_v17  ;;  %v2207_v39 = vmax.f32 %v2079_v31, 0.0 }
 0x285   :  { %v1844_v4 = vadd.f32 %v1843_v62, %v1794_v6  ;;  %v2247_v62 = vld [vmem:[%s3465_s5] sm:$0x7] }
 0x286   :  { %v1972_v28 = vpack.c.bf16 %v1937_v43, %v1937_v43  ;;  %2256 = vst [vmem:[#allocation1] ss:$9 sm:$0xff] %v2247_v62 }
 0x288   :  { %v2031_v52 = vunpack.c.l.bf16 %v1972_v28 }
 0x289   :  { %v1890_v0 = vpop.f32.mrf.mxu2  ;;  %v1939_v2 = vpop.f32.mrf.mxu3 }
 0x28a   :  { %v1891_v16 = vadd.f32 %v1890_v0, %v1842_v22  ;;  %v2082_v3 = vadd.f32 %v3409_v53, %v2031_v52 }
 0x28c   :  { %v1797_v9 = vpop.f32.mrf.mxu0  ;;  %v1846_v48 = vpop.f32.mrf.mxu1  ;;  %v1940_v5 = vadd.f32 %v1939_v2, %v1891_v16  ;;  %v2210_v63 = vmax.f32 %v2082_v3, 0.0 }
 0x28d   :  { %v1847_v61 = vadd.f32 %v1846_v48, %v1797_v9  ;;  %v2257_v0 = vld [vmem:[#allocation1] sm:$0xff]  ;;  %v2258_v2 = vld [vmem:[#allocation1 + $0x9] sm:$0xff] }
 0x28e   :  { %v1974_v58 = vpack.c.bf16 %v1940_v5, %v1940_v5  ;;  %v2240_v6 = vpack.c.bf16 %v2210_v63, %v2207_v39  ;;  %2271 = vmatmul.bf16.vlgmr.msra.gmra.mxu0 %v2257_v0  ;;  %2284 = vmatmul.bf16.vlgmr.msra.gmra.mxu1 %v2258_v2 }
 0x290   :  { %v2034_v59 = vunpack.c.l.bf16 %v1974_v58 }
 0x291   :  { %v1892_v15 = vpop.f32.mrf.mxu2  ;;  %v1941_v12 = vpop.f32.mrf.mxu3 }
 0x292   :  { %v1893_v25 = vadd.f32 %v1892_v15, %v1844_v4  ;;  %v2085_v26 = vadd.f32 %v3409_v53, %v2034_v59  ;;  %v2248_v15 = vld [vmem:[#allocation2] sm:$0x1] }
 0x294   :  { %v1799_v8 = vpop.f32.mrf.mxu0  ;;  %v1848_v33 = vpop.f32.mrf.mxu1  ;;  %v1942_v45 = vadd.f32 %v1941_v12, %v1893_v25  ;;  %v2213_v14 = vmax.f32 %v2085_v26, 0.0  ;;  %v2259_v12 = vld [vmem:[#allocation1 + $0x12] sm:$0xff] }
 0x295   :  { %v1849_v19 = vadd.f32 %v1848_v33, %v1799_v8 }
 0x296   :  { %v1976_v27 = vpack.c.bf16 %v1942_v45, %v1942_v45 }
 0x298   :  { %v2037_v20 = vunpack.c.l.bf16 %v1976_v27 }
 0x299   :  { %v1895_v37 = vpop.f32.mrf.mxu2  ;;  %v1944_v7 = vpop.f32.mrf.mxu3 }
 0x29a   :  { %v1896_v60 = vadd.f32 %v1895_v37, %v1847_v61  ;;  %v2088_v50 = vadd.f32 %v3409_v53, %v2037_v20 }
 0x29c   :  { %v1945_v56 = vadd.f32 %v1944_v7, %v1896_v60  ;;  %v2216_v18 = vmax.f32 %v2088_v50, 0.0 }
 0x29e   :  { %v1978_v38 = vpack.c.bf16 %v1945_v56, %v1945_v56  ;;  %v2243_v36 = vpack.c.bf16 %v2216_v18, %v2213_v14 }
 0x2a0   :  { %v2040_v51 = vunpack.c.l.bf16 %v1978_v38 }
 0x2a1   :  { %v1897_v41 = vpop.f32.mrf.mxu2  ;;  %v1946_v49 = vpop.f32.mrf.mxu3 }
 0x2a2   :  { %v1898_v1 = vadd.f32 %v1897_v41, %v1849_v19  ;;  %v2091_v21 = vadd.f32 %v3409_v53, %v2040_v51 }
 0x2a4   :  { %v1947_v23 = vadd.f32 %v1946_v49, %v1898_v1  ;;  %v2219_v55 = vmax.f32 %v2091_v21, 0.0 }
 0x2a6   :  { %v1980_v13 = vpack.c.bf16 %v1947_v23, %v1947_v23 }
 0x2a8   :  { %v2043_v57 = vunpack.c.l.bf16 %v1980_v13 }
 0x2aa   :  { %v2094_v32 = vadd.f32 %v3409_v53, %v2043_v57  ;;  %v2918_v53 = vmov 0  }
 0x2ab   :  { %2886 = vset.pattern.permute.xlu0 %v2918_v53 }
 0x2ac   :  { %v2222_v30 = vmax.f32 %v2094_v32, 0.0  ;;  %2251 = vperm.xlu0 %2886, %v2248_v15  }
 0x2ae   :  { %v2246_v29 = vpack.c.bf16 %v2222_v30, %v2219_v55 }
 0x2b0   :  { %2289 = vmatpush.bf16.xpose.msra.mxu2 %v2246_v29 }
 0x2b8   :  { %2290 = vmatpush.bf16.xpose.msra.mxu2 %v2243_v36 }
 0x2c0   :  { %2291 = vmatpush.bf16.xpose.msra.mxu2 %v2240_v6 }
 0x2c8   :  { %2292 = vmatpush.bf16.xpose.msra.mxu2 %v3441_v10 }
 0x2d0   :  { %2293 = vmatpush.bf16.xpose.msra.mxu2 %v3437_v42 }
 0x2d8   :  { %2294 = vmatpush.bf16.xpose.msra.mxu2 %v3429_v11 }
 0x2e0   :  { %2295 = vmatpush.bf16.xpose.msra.mxu2 %v3421_v44 }
 0x2e8   :  { %2296 = vmatpush.bf16.xpose.msra.mxu2 %v3413_v54 }
 0x2ef   :  { %2297 = vmatmul.bf16.vlgmr.msra.gmra.mxu2 %v2259_v12 }
 0x30b   :  { %v2272_v9 = vpop.f32.mrf.mxu0  ;;  %v2285_v10 = vpop.f32.mrf.mxu1 }
 0x313   :  { %v2274_v48 = vpop.f32.mrf.mxu0  ;;  %v2287_v61 = vpop.f32.mrf.mxu1 }
 0x31e   :  { %v2252_v37 = vpop.permute.xlu0 %2251 }
 0x31f   :  { %v2254_v7 = vperm.slane %v2252_v37, 0 }
 0x321   :  { %v2273_v60 = vadd.f32 %v2272_v9, %v2254_v7 }
 0x323   :  { %v2286_v4 = vadd.f32 %v2285_v10, %v2273_v60 }
 0x372   :  { %v2298_v42 = vpop.f32.mrf.mxu2 }
 0x373   :  { %v2299_v56 = vadd.f32 %v2298_v42, %v2286_v4 }
 0x375   :  { %2887 = vtanh.f32 %v2299_v56 }
 0x37a   :  { %v2300_v8 = vpop.f32.mrf.mxu2 }
 0x37b   :  { %v2888_v33 = vpop.eup %2887 }
 0x37c   :  { %v2303_v11 = vmul.f32 0.1, %v2888_v33 }
 0x37e   :  { %2304 = vst [vmem:[%s3467_s7] sm:$0x1] %v2303_v11 }
 0x37f   :  { %2309 = vsyncpa [#allocation4], 1 }

</bundles_post_ra>
